<compile_context>
chip_gen: v7x
topology: tpu7x:2x2x1
jax: 0.10.0
libtpu: 0.0.40
codegen_flags: <defaults>
</compile_context>

<pallas_src>
import math

import jax
import jax.numpy as jnp
from jax import lax
from jax.experimental import pallas as pl
from jax.experimental.pallas import tpu as pltpu


def _pblstm_kernel(len_ref, x_ref, w_in_ref, b_in_ref, whh_f_ref, whh_b_ref,
                   out_ref, g_ref):
    """Fused bidirectional LSTM over a whole (small) sequence held in VMEM.

    Shapes (time-major, flattened over (T2, N)):
      len_ref   : (N, 1)       int32  valid (already halved) length per seq
      x_ref     : (T2*N, F)    f32    frame-paired inputs
      w_in_ref  : (F, 8H)      f32    [W_ih_fwd | W_ih_bwd], pre-transposed
      b_in_ref  : (1, 8H)      f32    merged biases (ih + hh), both directions
      whh_f_ref : (H, 4H)      f32
      whh_b_ref : (H, 4H)      f32
      out_ref   : (T2*N, 2H)   f32    fwd hidden in [:, :H], bwd in [:, H:]
      g_ref     : (T2*N, 8H)   f32    VMEM scratch: hoisted input projection
    """
    TN, _ = x_ref.shape
    N = len_ref.shape[0]
    T2 = TN // N
    H = whh_f_ref.shape[0]

    # ---- Hoisted input projection: one big, well-shaped MXU matmul for both
    # directions with the bias folded in.  Replaces 2*T2 tiny latency-bound
    # per-step matmuls.
    g_ref[...] = (
        jnp.dot(x_ref[...], w_in_ref[...], preferred_element_type=jnp.float32)
        + b_in_ref[...]
    )

    lens = len_ref[...]                       # (N, 1) int32
    whh_f = whh_f_ref[...]
    whh_b = whh_b_ref[...]

    def apply_gates(gates, c):
        # PyTorch gate order: i, f, g, o.  H is a multiple of 128 in the demo,
        # so these lane slices are zero-cost views.
        i_g = jax.nn.sigmoid(gates[:, 0 * H:1 * H])
        f_g = jax.nn.sigmoid(gates[:, 1 * H:2 * H])
        g_g = jnp.tanh(gates[:, 2 * H:3 * H])
        o_g = jax.nn.sigmoid(gates[:, 3 * H:4 * H])
        c_new = f_g * c + i_g * g_g
        h_new = o_g * jnp.tanh(c_new)
        return h_new, c_new

    zeros = jnp.zeros((N, H), jnp.float32)

    # ---- Fused forward + backward recurrence: process t and T2-1-t in the
    # same iteration.  The two chains share no state, so their matmuls and
    # transcendentals interleave and hide each other's latency.
    def body(t, carry):
        h_f, c_f, h_b, c_b = carry
        tb = T2 - 1 - t
        off_f = pl.multiple_of(t * N, N)
        off_b = pl.multiple_of(tb * N, N)

        gx_f = g_ref[pl.ds(off_f, N), 0:4 * H]           # (N, 4H)
        gx_b = g_ref[pl.ds(off_b, N), 4 * H:8 * H]       # (N, 4H)

        gates_f = gx_f + jnp.dot(h_f, whh_f, preferred_element_type=jnp.float32)
        gates_b = gx_b + jnp.dot(h_b, whh_b, preferred_element_type=jnp.float32)

        hf_new, cf_new = apply_gates(gates_f, c_f)
        hb_new, cb_new = apply_gates(gates_b, c_b)

        mask_f = t < lens                                # (N, 1) bool
        mask_b = tb < lens

        h_f = jnp.where(mask_f, hf_new, h_f)
        c_f = jnp.where(mask_f, cf_new, c_f)
        h_b = jnp.where(mask_b, hb_new, h_b)
        c_b = jnp.where(mask_b, cb_new, c_b)

        # Zeros in padded positions, matching pad_packed_sequence output.
        out_ref[pl.ds(off_f, N), 0:H] = jnp.where(mask_f, hf_new, 0.0)
        out_ref[pl.ds(off_b, N), H:2 * H] = jnp.where(mask_b, hb_new, 0.0)
        return h_f, c_f, h_b, c_b

    # T2 is small & static here -> full unroll gives the scheduler
    # cross-iteration visibility.  For long sequences use a partial unroll.
    lax.fori_loop(0, T2, body, (zeros, zeros, zeros, zeros), unroll=True)


def pblstm_forward(x, lengths, params):
    """pBLSTM forward.

    x:       (N, T, D) float32, batch-first padded input.
    lengths: (N,) int32 valid lengths.
    params:  dict of LSTM weights (PyTorch layout, see init_pblstm_params).
    Returns: (out, new_lengths) with out (N, T//2, 2*H) (zeros in padding).
    """
    N, T, D = x.shape
    T2 = T // 2
    F = 2 * D
    # frame pairing (drop the last odd frame, as in the PyTorch module)
    x = x[:, :T2 * 2, :].reshape(N, T2, F)
    lengths2 = (lengths // 2).astype(jnp.int32)

    H = params["whh_f"].shape[0]             # whh is (H, 4H) -> H

    # time-major, flattened over (T2, N): single input transpose.
    x_tm = jnp.transpose(x, (1, 0, 2)).reshape(T2 * N, F).astype(jnp.float32)
    len_col = lengths2.reshape(N, 1)

    # Both directions' input weights / biases fused into one MXU operand.
    w_in = jnp.concatenate([params["wih_f"], params["wih_b"]], axis=1)  # (F, 8H)
    b_in = jnp.concatenate([params["b_f"], params["b_b"]], axis=1)      # (1, 8H)

    vmem = pl.BlockSpec(memory_space=pltpu.MemorySpace.VMEM)

    f32b = 4
    resident = f32b * (T2 * N * F            # x
                       + F * 8 * H + 8 * H   # fused input weights + bias
                       + 2 * H * 4 * H       # recurrent weights
                       + T2 * N * 8 * H      # gate scratch
                       + T2 * N * 2 * H      # output
                       + 8 * N)              # lengths (padded)
    vmem_limit = int(min(max(2 * resident + (1 << 20), 16 << 20), 64 << 20))

    out_flat = pl.pallas_call(
        _pblstm_kernel,
        out_shape=jax.ShapeDtypeStruct((T2 * N, 2 * H), jnp.float32),
        in_specs=[vmem] * 6,
        out_specs=vmem,
        scratch_shapes=[pltpu.VMEM((T2 * N, 8 * H), jnp.float32)],
        compiler_params=pltpu.CompilerParams(vmem_limit_bytes=vmem_limit),
    )(len_col, x_tm, w_in, b_in, params["whh_f"], params["whh_b"])

    out = out_flat.reshape(T2, N, 2 * H)
    return jnp.transpose(out, (1, 0, 2)), lengths2       # (N, T2, 2H)


def init_pblstm_params(key, input_dim, hidden_dim):
    """Deterministic init matching PyTorch nn.LSTM parameter shapes.

    PyTorch: weight_ih (4H, input_dim), weight_hh (4H, H), bias_ih/bias_hh (4H,)
    per direction.  We pre-transpose weights and merge the two biases.
    """
    H = hidden_dim
    bound = 1.0 / math.sqrt(H)
    ks = jax.random.split(key, 8)

    def u(k, shape):
        return jax.random.uniform(k, shape, jnp.float32, -bound, bound)

    w_ih_f = u(ks[0], (4 * H, input_dim))
    w_hh_f = u(ks[1], (4 * H, H))
    b_ih_f = u(ks[2], (4 * H,))
    b_hh_f = u(ks[3], (4 * H,))
    w_ih_b = u(ks[4], (4 * H, input_dim))
    w_hh_b = u(ks[5], (4 * H, H))
    b_ih_b = u(ks[6], (4 * H,))
    b_hh_b = u(ks[7], (4 * H,))

    return {
        "wih_f": w_ih_f.T,                          # (input_dim, 4H)
        "whh_f": w_hh_f.T,                          # (H, 4H)
        "b_f": (b_ih_f + b_hh_f).reshape(1, 4 * H),
        "wih_b": w_ih_b.T,
        "whh_b": w_hh_b.T,
        "b_b": (b_ih_b + b_hh_b).reshape(1, 4 * H),
    }


# ----------------------- pure-JAX reference (for checking) -----------------------
def _ref_lstm_dir(x_tm, lens, wih, whh, b, reverse):
    T2, N, _ = x_tm.shape
    H = whh.shape[0]

    def step(carry, inp):
        h, c = carry
        xt, t = inp
        gates = xt @ wih + h @ whh + b
        i_g = jax.nn.sigmoid(gates[:, 0 * H:1 * H])
        f_g = jax.nn.sigmoid(gates[:, 1 * H:2 * H])
        g_g = jnp.tanh(gates[:, 2 * H:3 * H])
        o_g = jax.nn.sigmoid(gates[:, 3 * H:4 * H])
        c_new = f_g * c + i_g * g_g
        h_new = o_g * jnp.tanh(c_new)
        mask = (t < lens)
        h = jnp.where(mask, h_new, h)
        c = jnp.where(mask, c_new, c)
        out = jnp.where(mask, h_new, 0.0)
        return (h, c), out

    ts = jnp.arange(T2)
    if reverse:
        xs, ts = x_tm[::-1], ts[::-1]
    else:
        xs = x_tm
    zeros = jnp.zeros((N, H), jnp.float32)
    _, outs = lax.scan(step, (zeros, zeros), (xs, ts))
    if reverse:
        outs = outs[::-1]
    return outs


def pblstm_reference(x, lengths, params):
    N, T, D = x.shape
    T2 = T // 2
    x = x[:, :T2 * 2, :].reshape(N, T2, 2 * D)
    lengths2 = (lengths // 2).astype(jnp.int32)
    x_tm = jnp.transpose(x, (1, 0, 2)).astype(jnp.float32)
    lens = lengths2.reshape(N, 1)
    out_f = _ref_lstm_dir(x_tm, lens, params["wih_f"], params["whh_f"], params["b_f"], False)
    out_b = _ref_lstm_dir(x_tm, lens, params["wih_b"], params["whh_b"], params["b_b"], True)
    out = jnp.concatenate([out_f, out_b], axis=-1)
    return jnp.transpose(out, (1, 0, 2)), lengths2


if __name__ == "__main__":
    # Small but hardware-aligned shapes: N multiple of 8 (f32 sublanes),
    # 2*D = 128 and H = 128 (lane tiles) so gate slices and stores are
    # tile-aligned and the fused output (2H = 256 lanes) is lane-dense.
    N, T, D, H = 8, 8, 64, 128
    key = jax.random.PRNGKey(0)
    kx, kp = jax.random.split(key)

    x = jax.random.normal(kx, (N, T, D), dtype=jnp.float32)
    lengths = jnp.array([8, 6, 8, 4, 7, 8, 5, 2], dtype=jnp.int32)  # ragged batch

    params = init_pblstm_params(kp, input_dim=2 * D, hidden_dim=H)

    fwd = jax.jit(pblstm_forward)
    out, new_lengths = fwd(x, lengths, params)
    out = jax.block_until_ready(out)

    ref, ref_lengths = pblstm_reference(x, lengths, params)
    assert out.shape == (N, T // 2, 2 * H), out.shape
    assert bool(jnp.all(new_lengths == ref_lengths))
    assert bool(jnp.allclose(out, ref, atol=2e-3, rtol=2e-3)), \
        float(jnp.max(jnp.abs(out - ref)))

    print("KERNEL_OK")
</pallas_src>

<mosaic_0001>
module attributes {stable_mosaic.version = 11 : i64} {
  func.func @_pblstm_kernel(%arg0: memref<8x1xi32, #tpu.memory_space<vmem>>, %arg1: memref<32x128xf32, #tpu.memory_space<vmem>>, %arg2: memref<128x1024xf32, #tpu.memory_space<vmem>>, %arg3: memref<1x1024xf32, #tpu.memory_space<vmem>>, %arg4: memref<128x512xf32, #tpu.memory_space<vmem>>, %arg5: memref<128x512xf32, #tpu.memory_space<vmem>>, %arg6: memref<32x256xf32, #tpu.memory_space<vmem>>, %arg7: memref<32x1024xf32, #tpu.memory_space<vmem>>) attributes {dimension_semantics = [], scalar_prefetch = 0 : i64, scratch_operands = 1 : i64, tpu.core_type = #tpu.core_type<tc>} {
    %c0 = arith.constant 0 : index
    %c0_0 = arith.constant 0 : index
    %0 = vector.load %arg1[%c0, %c0_0] : memref<32x128xf32, #tpu.memory_space<vmem>>, vector<32x128xf32>
    %c0_1 = arith.constant 0 : index
    %c0_2 = arith.constant 0 : index
    %1 = vector.load %arg2[%c0_1, %c0_2] : memref<128x1024xf32, #tpu.memory_space<vmem>>, vector<128x1024xf32>
    %cst = arith.constant dense<0.000000e+00> : vector<32x1024xf32>
    %2 = tpu.matmul %0, %1, %cst {dimension_numbers = #tpu.dot_dimension_numbers<[1], [0], [0], [1], [0, 0, 1, 1], [], []>} : vector<32x128xf32>, vector<128x1024xf32>, vector<32x1024xf32> -> vector<32x1024xf32>
    %c0_3 = arith.constant 0 : index
    %c0_4 = arith.constant 0 : index
    %3 = vector.load %arg3[%c0_3, %c0_4] : memref<1x1024xf32, #tpu.memory_space<vmem>>, vector<1x1024xf32>
    %4 = vector.broadcast %3 : vector<1x1024xf32> to vector<32x1024xf32>
    %5 = arith.addf %2, %4 : vector<32x1024xf32>
    %c0_5 = arith.constant 0 : index
    %c0_6 = arith.constant 0 : index
    %6 = vector.load %arg7[%c0_5, %c0_6] : memref<32x1024xf32, #tpu.memory_space<vmem>>, vector<32x1024xf32>
    tpu.vector_store %arg7[%c0_5, %c0_6], %5 {strides = array<i32>} : memref<32x1024xf32, #tpu.memory_space<vmem>>, vector<32x1024xf32>,
    %c0_7 = arith.constant 0 : index
    %c0_8 = arith.constant 0 : index
    %7 = vector.load %arg0[%c0_7, %c0_8] : memref<8x1xi32, #tpu.memory_space<vmem>>, vector<8x1xi32>
    %c0_9 = arith.constant 0 : index
    %c0_10 = arith.constant 0 : index
    %8 = vector.load %arg4[%c0_9, %c0_10] : memref<128x512xf32, #tpu.memory_space<vmem>>, vector<128x512xf32>
    %c0_11 = arith.constant 0 : index
    %c0_12 = arith.constant 0 : index
    %9 = vector.load %arg5[%c0_11, %c0_12] : memref<128x512xf32, #tpu.memory_space<vmem>>, vector<128x512xf32>
    %cst_13 = arith.constant 0.000000e+00 : f32
    %10 = vector.broadcast %cst_13 : f32 to vector<8x128xf32>
    %c0_i32 = arith.constant 0 : i32
    %c3_i32 = arith.constant 3 : i32
    %11 = arith.subi %c3_i32, %c0_i32 : i32
    %c8_i32 = arith.constant 8 : i32
    %12 = arith.muli %c0_i32, %c8_i32 : i32
    %13 = tpu.assume_multiple %12, 8 : i32
    %c8_i32_14 = arith.constant 8 : i32
    %14 = arith.muli %11, %c8_i32_14 : i32
    %15 = tpu.assume_multiple %14, 8 : i32
    %16 = arith.index_cast %13 : i32 to index
    %c0_15 = arith.constant 0 : index
    %17 = vector.load %arg7[%16, %c0_15] : memref<32x1024xf32, #tpu.memory_space<vmem>>, vector<8x512xf32>
    %18 = arith.index_cast %15 : i32 to index
    %c512 = arith.constant 512 : index
    %19 = vector.load %arg7[%18, %c512] : memref<32x1024xf32, #tpu.memory_space<vmem>>, vector<8x512xf32>
    %cst_16 = arith.constant dense<0.000000e+00> : vector<8x512xf32>
    %20 = tpu.matmul %10, %8, %cst_16 {dimension_numbers = #tpu.dot_dimension_numbers<[1], [0], [0], [1], [0, 0, 1, 1], [], []>} : vector<8x128xf32>, vector<128x512xf32>, vector<8x512xf32> -> vector<8x512xf32>
    %21 = arith.addf %17, %20 : vector<8x512xf32>
    %cst_17 = arith.constant dense<0.000000e+00> : vector<8x512xf32>
    %22 = tpu.matmul %10, %9, %cst_17 {dimension_numbers = #tpu.dot_dimension_numbers<[1], [0], [0], [1], [0, 0, 1, 1], [], []>} : vector<8x128xf32>, vector<128x512xf32>, vector<8x512xf32> -> vector<8x512xf32>
    %23 = arith.addf %19, %22 : vector<8x512xf32>
    %24 = vector.extract_strided_slice %21 {offsets = [0, 0], sizes = [8, 128], strides = [1, 1]} : vector<8x512xf32> to vector<8x128xf32>
    %25 = arith.negf %24 : vector<8x128xf32>
    %26 = math.exp %25 : vector<8x128xf32>
    %cst_18 = arith.constant 1.000000e+00 : f32
    %27 = vector.broadcast %cst_18 : f32 to vector<8x128xf32>
    %28 = arith.addf %27, %26 : vector<8x128xf32>
    %29 = arith.divf %27, %28 : vector<8x128xf32>
    %30 = vector.extract_strided_slice %21 {offsets = [0, 128], sizes = [8, 128], strides = [1, 1]} : vector<8x512xf32> to vector<8x128xf32>
    %31 = arith.negf %30 : vector<8x128xf32>
    %32 = math.exp %31 : vector<8x128xf32>
    %cst_19 = arith.constant 1.000000e+00 : f32
    %33 = vector.broadcast %cst_19 : f32 to vector<8x128xf32>
    %34 = arith.addf %33, %32 : vector<8x128xf32>
    %35 = arith.divf %33, %34 : vector<8x128xf32>
    %36 = vector.extract_strided_slice %21 {offsets = [0, 256], sizes = [8, 128], strides = [1, 1]} : vector<8x512xf32> to vector<8x128xf32>
    %37 = math.tanh %36 : vector<8x128xf32>
    %38 = vector.extract_strided_slice %21 {offsets = [0, 384], sizes = [8, 128], strides = [1, 1]} : vector<8x512xf32> to vector<8x128xf32>
    %39 = arith.negf %38 : vector<8x128xf32>
    %40 = math.exp %39 : vector<8x128xf32>
    %cst_20 = arith.constant 1.000000e+00 : f32
    %41 = vector.broadcast %cst_20 : f32 to vector<8x128xf32>
    %42 = arith.addf %41, %40 : vector<8x128xf32>
    %43 = arith.divf %41, %42 : vector<8x128xf32>
    %44 = arith.mulf %35, %10 : vector<8x128xf32>
    %45 = arith.mulf %29, %37 : vector<8x128xf32>
    %46 = arith.addf %44, %45 : vector<8x128xf32>
    %47 = math.tanh %46 : vector<8x128xf32>
    %48 = arith.mulf %43, %47 : vector<8x128xf32>
    %49 = vector.extract_strided_slice %23 {offsets = [0, 0], sizes = [8, 128], strides = [1, 1]} : vector<8x512xf32> to vector<8x128xf32>
    %50 = arith.negf %49 : vector<8x128xf32>
    %51 = math.exp %50 : vector<8x128xf32>
    %cst_21 = arith.constant 1.000000e+00 : f32
    %52 = vector.broadcast %cst_21 : f32 to vector<8x128xf32>
    %53 = arith.addf %52, %51 : vector<8x128xf32>
    %54 = arith.divf %52, %53 : vector<8x128xf32>
    %55 = vector.extract_strided_slice %23 {offsets = [0, 128], sizes = [8, 128], strides = [1, 1]} : vector<8x512xf32> to vector<8x128xf32>
    %56 = arith.negf %55 : vector<8x128xf32>
    %57 = math.exp %56 : vector<8x128xf32>
    %cst_22 = arith.constant 1.000000e+00 : f32
    %58 = vector.broadcast %cst_22 : f32 to vector<8x128xf32>
    %59 = arith.addf %58, %57 : vector<8x128xf32>
    %60 = arith.divf %58, %59 : vector<8x128xf32>
    %61 = vector.extract_strided_slice %23 {offsets = [0, 256], sizes = [8, 128], strides = [1, 1]} : vector<8x512xf32> to vector<8x128xf32>
    %62 = math.tanh %61 : vector<8x128xf32>
    %63 = vector.extract_strided_slice %23 {offsets = [0, 384], sizes = [8, 128], strides = [1, 1]} : vector<8x512xf32> to vector<8x128xf32>
    %64 = arith.negf %63 : vector<8x128xf32>
    %65 = math.exp %64 : vector<8x128xf32>
    %cst_23 = arith.constant 1.000000e+00 : f32
    %66 = vector.broadcast %cst_23 : f32 to vector<8x128xf32>
    %67 = arith.addf %66, %65 : vector<8x128xf32>
    %68 = arith.divf %66, %67 : vector<8x128xf32>
    %69 = arith.mulf %60, %10 : vector<8x128xf32>
    %70 = arith.mulf %54, %62 : vector<8x128xf32>
    %71 = arith.addf %69, %70 : vector<8x128xf32>
    %72 = math.tanh %71 : vector<8x128xf32>
    %73 = arith.mulf %68, %72 : vector<8x128xf32>
    %74 = vector.broadcast %c0_i32 : i32 to vector<8x1xi32>
    %75 = arith.cmpi slt, %74, %7 : vector<8x1xi32>
    %76 = vector.broadcast %11 : i32 to vector<8x1xi32>
    %77 = arith.cmpi slt, %76, %7 : vector<8x1xi32>
    %78 = vector.shape_cast %75 : vector<8x1xi1> to vector<8x1xi1>
    %79 = vector.broadcast %78 : vector<8x1xi1> to vector<8x128xi1>
    %80 = arith.select %79, %48, %10 : vector<8x128xi1>, vector<8x128xf32>
    %81 = vector.shape_cast %75 : vector<8x1xi1> to vector<8x1xi1>
    %82 = vector.broadcast %81 : vector<8x1xi1> to vector<8x128xi1>
    %83 = arith.select %82, %46, %10 : vector<8x128xi1>, vector<8x128xf32>
    %84 = vector.shape_cast %77 : vector<8x1xi1> to vector<8x1xi1>
    %85 = vector.broadcast %84 : vector<8x1xi1> to vector<8x128xi1>
    %86 = arith.select %85, %73, %10 : vector<8x128xi1>, vector<8x128xf32>
    %87 = vector.shape_cast %77 : vector<8x1xi1> to vector<8x1xi1>
    %88 = vector.broadcast %87 : vector<8x1xi1> to vector<8x128xi1>
    %89 = arith.select %88, %71, %10 : vector<8x128xi1>, vector<8x128xf32>
    %cst_24 = arith.constant 0.000000e+00 : f32
    %90 = vector.shape_cast %75 : vector<8x1xi1> to vector<8x1xi1>
    %91 = vector.broadcast %90 : vector<8x1xi1> to vector<8x128xi1>
    %92 = vector.broadcast %cst_24 : f32 to vector<8x128xf32>
    %93 = arith.select %91, %48, %92 : vector<8x128xi1>, vector<8x128xf32>
    %94 = arith.index_cast %13 : i32 to index
    %c0_25 = arith.constant 0 : index
    %95 = vector.load %arg6[%94, %c0_25] : memref<32x256xf32, #tpu.memory_space<vmem>>, vector<8x128xf32>
    tpu.vector_store %arg6[%94, %c0_25], %93 {strides = array<i32>} : memref<32x256xf32, #tpu.memory_space<vmem>>, vector<8x128xf32>,
    %cst_26 = arith.constant 0.000000e+00 : f32
    %96 = vector.shape_cast %77 : vector<8x1xi1> to vector<8x1xi1>
    %97 = vector.broadcast %96 : vector<8x1xi1> to vector<8x128xi1>
    %98 = vector.broadcast %cst_26 : f32 to vector<8x128xf32>
    %99 = arith.select %97, %73, %98 : vector<8x128xi1>, vector<8x128xf32>
    %100 = arith.index_cast %15 : i32 to index
    %c128 = arith.constant 128 : index
    %101 = vector.load %arg6[%100, %c128] : memref<32x256xf32, #tpu.memory_space<vmem>>, vector<8x128xf32>
    tpu.vector_store %arg6[%100, %c128], %99 {strides = array<i32>} : memref<32x256xf32, #tpu.memory_space<vmem>>, vector<8x128xf32>,
    %c1_i32 = arith.constant 1 : i32
    %c3_i32_27 = arith.constant 3 : i32
    %102 = arith.subi %c3_i32_27, %c1_i32 : i32
    %c8_i32_28 = arith.constant 8 : i32
    %103 = arith.muli %c1_i32, %c8_i32_28 : i32
    %104 = tpu.assume_multiple %103, 8 : i32
    %c8_i32_29 = arith.constant 8 : i32
    %105 = arith.muli %102, %c8_i32_29 : i32
    %106 = tpu.assume_multiple %105, 8 : i32
    %107 = arith.index_cast %104 : i32 to index
    %c0_30 = arith.constant 0 : index
    %108 = vector.load %arg7[%107, %c0_30] : memref<32x1024xf32, #tpu.memory_space<vmem>>, vector<8x512xf32>
    %109 = arith.index_cast %106 : i32 to index
    %c512_31 = arith.constant 512 : index
    %110 = vector.load %arg7[%109, %c512_31] : memref<32x1024xf32, #tpu.memory_space<vmem>>, vector<8x512xf32>
    %cst_32 = arith.constant dense<0.000000e+00> : vector<8x512xf32>
    %111 = tpu.matmul %80, %8, %cst_32 {dimension_numbers = #tpu.dot_dimension_numbers<[1], [0], [0], [1], [0, 0, 1, 1], [], []>} : vector<8x128xf32>, vector<128x512xf32>, vector<8x512xf32> -> vector<8x512xf32>
    %112 = arith.addf %108, %111 : vector<8x512xf32>
    %cst_33 = arith.constant dense<0.000000e+00> : vector<8x512xf32>
    %113 = tpu.matmul %86, %9, %cst_33 {dimension_numbers = #tpu.dot_dimension_numbers<[1], [0], [0], [1], [0, 0, 1, 1], [], []>} : vector<8x128xf32>, vector<128x512xf32>, vector<8x512xf32> -> vector<8x512xf32>
    %114 = arith.addf %110, %113 : vector<8x512xf32>
    %115 = vector.extract_strided_slice %112 {offsets = [0, 0], sizes = [8, 128], strides = [1, 1]} : vector<8x512xf32> to vector<8x128xf32>
    %116 = arith.negf %115 : vector<8x128xf32>
    %117 = math.exp %116 : vector<8x128xf32>
    %cst_34 = arith.constant 1.000000e+00 : f32
    %118 = vector.broadcast %cst_34 : f32 to vector<8x128xf32>
    %119 = arith.addf %118, %117 : vector<8x128xf32>
    %120 = arith.divf %118, %119 : vector<8x128xf32>
    %121 = vector.extract_strided_slice %112 {offsets = [0, 128], sizes = [8, 128], strides = [1, 1]} : vector<8x512xf32> to vector<8x128xf32>
    %122 = arith.negf %121 : vector<8x128xf32>
    %123 = math.exp %122 : vector<8x128xf32>
    %cst_35 = arith.constant 1.000000e+00 : f32
    %124 = vector.broadcast %cst_35 : f32 to vector<8x128xf32>
    %125 = arith.addf %124, %123 : vector<8x128xf32>
    %126 = arith.divf %124, %125 : vector<8x128xf32>
    %127 = vector.extract_strided_slice %112 {offsets = [0, 256], sizes = [8, 128], strides = [1, 1]} : vector<8x512xf32> to vector<8x128xf32>
    %128 = math.tanh %127 : vector<8x128xf32>
    %129 = vector.extract_strided_slice %112 {offsets = [0, 384], sizes = [8, 128], strides = [1, 1]} : vector<8x512xf32> to vector<8x128xf32>
    %130 = arith.negf %129 : vector<8x128xf32>
    %131 = math.exp %130 : vector<8x128xf32>
    %cst_36 = arith.constant 1.000000e+00 : f32
    %132 = vector.broadcast %cst_36 : f32 to vector<8x128xf32>
    %133 = arith.addf %132, %131 : vector<8x128xf32>
    %134 = arith.divf %132, %133 : vector<8x128xf32>
    %135 = arith.mulf %126, %83 : vector<8x128xf32>
    %136 = arith.mulf %120, %128 : vector<8x128xf32>
    %137 = arith.addf %135, %136 : vector<8x128xf32>
    %138 = math.tanh %137 : vector<8x128xf32>
    %139 = arith.mulf %134, %138 : vector<8x128xf32>
    %140 = vector.extract_strided_slice %114 {offsets = [0, 0], sizes = [8, 128], strides = [1, 1]} : vector<8x512xf32> to vector<8x128xf32>
    %141 = arith.negf %140 : vector<8x128xf32>
    %142 = math.exp %141 : vector<8x128xf32>
    %cst_37 = arith.constant 1.000000e+00 : f32
    %143 = vector.broadcast %cst_37 : f32 to vector<8x128xf32>
    %144 = arith.addf %143, %142 : vector<8x128xf32>
    %145 = arith.divf %143, %144 : vector<8x128xf32>
    %146 = vector.extract_strided_slice %114 {offsets = [0, 128], sizes = [8, 128], strides = [1, 1]} : vector<8x512xf32> to vector<8x128xf32>
    %147 = arith.negf %146 : vector<8x128xf32>
    %148 = math.exp %147 : vector<8x128xf32>
    %cst_38 = arith.constant 1.000000e+00 : f32
    %149 = vector.broadcast %cst_38 : f32 to vector<8x128xf32>
    %150 = arith.addf %149, %148 : vector<8x128xf32>
    %151 = arith.divf %149, %150 : vector<8x128xf32>
    %152 = vector.extract_strided_slice %114 {offsets = [0, 256], sizes = [8, 128], strides = [1, 1]} : vector<8x512xf32> to vector<8x128xf32>
    %153 = math.tanh %152 : vector<8x128xf32>
    %154 = vector.extract_strided_slice %114 {offsets = [0, 384], sizes = [8, 128], strides = [1, 1]} : vector<8x512xf32> to vector<8x128xf32>
    %155 = arith.negf %154 : vector<8x128xf32>
    %156 = math.exp %155 : vector<8x128xf32>
    %cst_39 = arith.constant 1.000000e+00 : f32
    %157 = vector.broadcast %cst_39 : f32 to vector<8x128xf32>
    %158 = arith.addf %157, %156 : vector<8x128xf32>
    %159 = arith.divf %157, %158 : vector<8x128xf32>
    %160 = arith.mulf %151, %89 : vector<8x128xf32>
    %161 = arith.mulf %145, %153 : vector<8x128xf32>
    %162 = arith.addf %160, %161 : vector<8x128xf32>
    %163 = math.tanh %162 : vector<8x128xf32>
    %164 = arith.mulf %159, %163 : vector<8x128xf32>
    %165 = vector.broadcast %c1_i32 : i32 to vector<8x1xi32>
    %166 = arith.cmpi slt, %165, %7 : vector<8x1xi32>
    %167 = vector.broadcast %102 : i32 to vector<8x1xi32>
    %168 = arith.cmpi slt, %167, %7 : vector<8x1xi32>
    %169 = vector.shape_cast %166 : vector<8x1xi1> to vector<8x1xi1>
    %170 = vector.broadcast %169 : vector<8x1xi1> to vector<8x128xi1>
    %171 = arith.select %170, %139, %80 : vector<8x128xi1>, vector<8x128xf32>
    %172 = vector.shape_cast %166 : vector<8x1xi1> to vector<8x1xi1>
    %173 = vector.broadcast %172 : vector<8x1xi1> to vector<8x128xi1>
    %174 = arith.select %173, %137, %83 : vector<8x128xi1>, vector<8x128xf32>
    %175 = vector.shape_cast %168 : vector<8x1xi1> to vector<8x1xi1>
    %176 = vector.broadcast %175 : vector<8x1xi1> to vector<8x128xi1>
    %177 = arith.select %176, %164, %86 : vector<8x128xi1>, vector<8x128xf32>
    %178 = vector.shape_cast %168 : vector<8x1xi1> to vector<8x1xi1>
    %179 = vector.broadcast %178 : vector<8x1xi1> to vector<8x128xi1>
    %180 = arith.select %179, %162, %89 : vector<8x128xi1>, vector<8x128xf32>
    %cst_40 = arith.constant 0.000000e+00 : f32
    %181 = vector.shape_cast %166 : vector<8x1xi1> to vector<8x1xi1>
    %182 = vector.broadcast %181 : vector<8x1xi1> to vector<8x128xi1>
    %183 = vector.broadcast %cst_40 : f32 to vector<8x128xf32>
    %184 = arith.select %182, %139, %183 : vector<8x128xi1>, vector<8x128xf32>
    %185 = arith.index_cast %104 : i32 to index
    %c0_41 = arith.constant 0 : index
    %186 = vector.load %arg6[%185, %c0_41] : memref<32x256xf32, #tpu.memory_space<vmem>>, vector<8x128xf32>
    tpu.vector_store %arg6[%185, %c0_41], %184 {strides = array<i32>} : memref<32x256xf32, #tpu.memory_space<vmem>>, vector<8x128xf32>,
    %cst_42 = arith.constant 0.000000e+00 : f32
    %187 = vector.shape_cast %168 : vector<8x1xi1> to vector<8x1xi1>
    %188 = vector.broadcast %187 : vector<8x1xi1> to vector<8x128xi1>
    %189 = vector.broadcast %cst_42 : f32 to vector<8x128xf32>
    %190 = arith.select %188, %164, %189 : vector<8x128xi1>, vector<8x128xf32>
    %191 = arith.index_cast %106 : i32 to index
    %c128_43 = arith.constant 128 : index
    %192 = vector.load %arg6[%191, %c128_43] : memref<32x256xf32, #tpu.memory_space<vmem>>, vector<8x128xf32>
    tpu.vector_store %arg6[%191, %c128_43], %190 {strides = array<i32>} : memref<32x256xf32, #tpu.memory_space<vmem>>, vector<8x128xf32>,
    %c2_i32 = arith.constant 2 : i32
    %c3_i32_44 = arith.constant 3 : i32
    %193 = arith.subi %c3_i32_44, %c2_i32 : i32
    %c8_i32_45 = arith.constant 8 : i32
    %194 = arith.muli %c2_i32, %c8_i32_45 : i32
    %195 = tpu.assume_multiple %194, 8 : i32
    %c8_i32_46 = arith.constant 8 : i32
    %196 = arith.muli %193, %c8_i32_46 : i32
    %197 = tpu.assume_multiple %196, 8 : i32
    %198 = arith.index_cast %195 : i32 to index
    %c0_47 = arith.constant 0 : index
    %199 = vector.load %arg7[%198, %c0_47] : memref<32x1024xf32, #tpu.memory_space<vmem>>, vector<8x512xf32>
    %200 = arith.index_cast %197 : i32 to index
    %c512_48 = arith.constant 512 : index
    %201 = vector.load %arg7[%200, %c512_48] : memref<32x1024xf32, #tpu.memory_space<vmem>>, vector<8x512xf32>
    %cst_49 = arith.constant dense<0.000000e+00> : vector<8x512xf32>
    %202 = tpu.matmul %171, %8, %cst_49 {dimension_numbers = #tpu.dot_dimension_numbers<[1], [0], [0], [1], [0, 0, 1, 1], [], []>} : vector<8x128xf32>, vector<128x512xf32>, vector<8x512xf32> -> vector<8x512xf32>
    %203 = arith.addf %199, %202 : vector<8x512xf32>
    %cst_50 = arith.constant dense<0.000000e+00> : vector<8x512xf32>
    %204 = tpu.matmul %177, %9, %cst_50 {dimension_numbers = #tpu.dot_dimension_numbers<[1], [0], [0], [1], [0, 0, 1, 1], [], []>} : vector<8x128xf32>, vector<128x512xf32>, vector<8x512xf32> -> vector<8x512xf32>
    %205 = arith.addf %201, %204 : vector<8x512xf32>
    %206 = vector.extract_strided_slice %203 {offsets = [0, 0], sizes = [8, 128], strides = [1, 1]} : vector<8x512xf32> to vector<8x128xf32>
    %207 = arith.negf %206 : vector<8x128xf32>
    %208 = math.exp %207 : vector<8x128xf32>
    %cst_51 = arith.constant 1.000000e+00 : f32
    %209 = vector.broadcast %cst_51 : f32 to vector<8x128xf32>
    %210 = arith.addf %209, %208 : vector<8x128xf32>
    %211 = arith.divf %209, %210 : vector<8x128xf32>
    %212 = vector.extract_strided_slice %203 {offsets = [0, 128], sizes = [8, 128], strides = [1, 1]} : vector<8x512xf32> to vector<8x128xf32>
    %213 = arith.negf %212 : vector<8x128xf32>
    %214 = math.exp %213 : vector<8x128xf32>
    %cst_52 = arith.constant 1.000000e+00 : f32
    %215 = vector.broadcast %cst_52 : f32 to vector<8x128xf32>
    %216 = arith.addf %215, %214 : vector<8x128xf32>
    %217 = arith.divf %215, %216 : vector<8x128xf32>
    %218 = vector.extract_strided_slice %203 {offsets = [0, 256], sizes = [8, 128], strides = [1, 1]} : vector<8x512xf32> to vector<8x128xf32>
    %219 = math.tanh %218 : vector<8x128xf32>
    %220 = vector.extract_strided_slice %203 {offsets = [0, 384], sizes = [8, 128], strides = [1, 1]} : vector<8x512xf32> to vector<8x128xf32>
    %221 = arith.negf %220 : vector<8x128xf32>
    %222 = math.exp %221 : vector<8x128xf32>
    %cst_53 = arith.constant 1.000000e+00 : f32
    %223 = vector.broadcast %cst_53 : f32 to vector<8x128xf32>
    %224 = arith.addf %223, %222 : vector<8x128xf32>
    %225 = arith.divf %223, %224 : vector<8x128xf32>
    %226 = arith.mulf %217, %174 : vector<8x128xf32>
    %227 = arith.mulf %211, %219 : vector<8x128xf32>
    %228 = arith.addf %226, %227 : vector<8x128xf32>
    %229 = math.tanh %228 : vector<8x128xf32>
    %230 = arith.mulf %225, %229 : vector<8x128xf32>
    %231 = vector.extract_strided_slice %205 {offsets = [0, 0], sizes = [8, 128], strides = [1, 1]} : vector<8x512xf32> to vector<8x128xf32>
    %232 = arith.negf %231 : vector<8x128xf32>
    %233 = math.exp %232 : vector<8x128xf32>
    %cst_54 = arith.constant 1.000000e+00 : f32
    %234 = vector.broadcast %cst_54 : f32 to vector<8x128xf32>
    %235 = arith.addf %234, %233 : vector<8x128xf32>
    %236 = arith.divf %234, %235 : vector<8x128xf32>
    %237 = vector.extract_strided_slice %205 {offsets = [0, 128], sizes = [8, 128], strides = [1, 1]} : vector<8x512xf32> to vector<8x128xf32>
    %238 = arith.negf %237 : vector<8x128xf32>
    %239 = math.exp %238 : vector<8x128xf32>
    %cst_55 = arith.constant 1.000000e+00 : f32
    %240 = vector.broadcast %cst_55 : f32 to vector<8x128xf32>
    %241 = arith.addf %240, %239 : vector<8x128xf32>
    %242 = arith.divf %240, %241 : vector<8x128xf32>
    %243 = vector.extract_strided_slice %205 {offsets = [0, 256], sizes = [8, 128], strides = [1, 1]} : vector<8x512xf32> to vector<8x128xf32>
    %244 = math.tanh %243 : vector<8x128xf32>
    %245 = vector.extract_strided_slice %205 {offsets = [0, 384], sizes = [8, 128], strides = [1, 1]} : vector<8x512xf32> to vector<8x128xf32>
    %246 = arith.negf %245 : vector<8x128xf32>
    %247 = math.exp %246 : vector<8x128xf32>
    %cst_56 = arith.constant 1.000000e+00 : f32
    %248 = vector.broadcast %cst_56 : f32 to vector<8x128xf32>
    %249 = arith.addf %248, %247 : vector<8x128xf32>
    %250 = arith.divf %248, %249 : vector<8x128xf32>
    %251 = arith.mulf %242, %180 : vector<8x128xf32>
    %252 = arith.mulf %236, %244 : vector<8x128xf32>
    %253 = arith.addf %251, %252 : vector<8x128xf32>
    %254 = math.tanh %253 : vector<8x128xf32>
    %255 = arith.mulf %250, %254 : vector<8x128xf32>
    %256 = vector.broadcast %c2_i32 : i32 to vector<8x1xi32>
    %257 = arith.cmpi slt, %256, %7 : vector<8x1xi32>
    %258 = vector.broadcast %193 : i32 to vector<8x1xi32>
    %259 = arith.cmpi slt, %258, %7 : vector<8x1xi32>
    %260 = vector.shape_cast %257 : vector<8x1xi1> to vector<8x1xi1>
    %261 = vector.broadcast %260 : vector<8x1xi1> to vector<8x128xi1>
    %262 = arith.select %261, %230, %171 : vector<8x128xi1>, vector<8x128xf32>
    %263 = vector.shape_cast %257 : vector<8x1xi1> to vector<8x1xi1>
    %264 = vector.broadcast %263 : vector<8x1xi1> to vector<8x128xi1>
    %265 = arith.select %264, %228, %174 : vector<8x128xi1>, vector<8x128xf32>
    %266 = vector.shape_cast %259 : vector<8x1xi1> to vector<8x1xi1>
    %267 = vector.broadcast %266 : vector<8x1xi1> to vector<8x128xi1>
    %268 = arith.select %267, %255, %177 : vector<8x128xi1>, vector<8x128xf32>
    %269 = vector.shape_cast %259 : vector<8x1xi1> to vector<8x1xi1>
    %270 = vector.broadcast %269 : vector<8x1xi1> to vector<8x128xi1>
    %271 = arith.select %270, %253, %180 : vector<8x128xi1>, vector<8x128xf32>
    %cst_57 = arith.constant 0.000000e+00 : f32
    %272 = vector.shape_cast %257 : vector<8x1xi1> to vector<8x1xi1>
    %273 = vector.broadcast %272 : vector<8x1xi1> to vector<8x128xi1>
    %274 = vector.broadcast %cst_57 : f32 to vector<8x128xf32>
    %275 = arith.select %273, %230, %274 : vector<8x128xi1>, vector<8x128xf32>
    %276 = arith.index_cast %195 : i32 to index
    %c0_58 = arith.constant 0 : index
    %277 = vector.load %arg6[%276, %c0_58] : memref<32x256xf32, #tpu.memory_space<vmem>>, vector<8x128xf32>
    tpu.vector_store %arg6[%276, %c0_58], %275 {strides = array<i32>} : memref<32x256xf32, #tpu.memory_space<vmem>>, vector<8x128xf32>,
    %cst_59 = arith.constant 0.000000e+00 : f32
    %278 = vector.shape_cast %259 : vector<8x1xi1> to vector<8x1xi1>
    %279 = vector.broadcast %278 : vector<8x1xi1> to vector<8x128xi1>
    %280 = vector.broadcast %cst_59 : f32 to vector<8x128xf32>
    %281 = arith.select %279, %255, %280 : vector<8x128xi1>, vector<8x128xf32>
    %282 = arith.index_cast %197 : i32 to index
    %c128_60 = arith.constant 128 : index
    %283 = vector.load %arg6[%282, %c128_60] : memref<32x256xf32, #tpu.memory_space<vmem>>, vector<8x128xf32>
    tpu.vector_store %arg6[%282, %c128_60], %281 {strides = array<i32>} : memref<32x256xf32, #tpu.memory_space<vmem>>, vector<8x128xf32>,
    %c3_i32_61 = arith.constant 3 : i32
    %c3_i32_62 = arith.constant 3 : i32
    %284 = arith.subi %c3_i32_62, %c3_i32_61 : i32
    %c8_i32_63 = arith.constant 8 : i32
    %285 = arith.muli %c3_i32_61, %c8_i32_63 : i32
    %286 = tpu.assume_multiple %285, 8 : i32
    %c8_i32_64 = arith.constant 8 : i32
    %287 = arith.muli %284, %c8_i32_64 : i32
    %288 = tpu.assume_multiple %287, 8 : i32
    %289 = arith.index_cast %286 : i32 to index
    %c0_65 = arith.constant 0 : index
    %290 = vector.load %arg7[%289, %c0_65] : memref<32x1024xf32, #tpu.memory_space<vmem>>, vector<8x512xf32>
    %291 = arith.index_cast %288 : i32 to index
    %c512_66 = arith.constant 512 : index
    %292 = vector.load %arg7[%291, %c512_66] : memref<32x1024xf32, #tpu.memory_space<vmem>>, vector<8x512xf32>
    %cst_67 = arith.constant dense<0.000000e+00> : vector<8x512xf32>
    %293 = tpu.matmul %262, %8, %cst_67 {dimension_numbers = #tpu.dot_dimension_numbers<[1], [0], [0], [1], [0, 0, 1, 1], [], []>} : vector<8x128xf32>, vector<128x512xf32>, vector<8x512xf32> -> vector<8x512xf32>
    %294 = arith.addf %290, %293 : vector<8x512xf32>
    %cst_68 = arith.constant dense<0.000000e+00> : vector<8x512xf32>
    %295 = tpu.matmul %268, %9, %cst_68 {dimension_numbers = #tpu.dot_dimension_numbers<[1], [0], [0], [1], [0, 0, 1, 1], [], []>} : vector<8x128xf32>, vector<128x512xf32>, vector<8x512xf32> -> vector<8x512xf32>
    %296 = arith.addf %292, %295 : vector<8x512xf32>
    %297 = vector.extract_strided_slice %294 {offsets = [0, 0], sizes = [8, 128], strides = [1, 1]} : vector<8x512xf32> to vector<8x128xf32>
    %298 = arith.negf %297 : vector<8x128xf32>
    %299 = math.exp %298 : vector<8x128xf32>
    %cst_69 = arith.constant 1.000000e+00 : f32
    %300 = vector.broadcast %cst_69 : f32 to vector<8x128xf32>
    %301 = arith.addf %300, %299 : vector<8x128xf32>
    %302 = arith.divf %300, %301 : vector<8x128xf32>
    %303 = vector.extract_strided_slice %294 {offsets = [0, 128], sizes = [8, 128], strides = [1, 1]} : vector<8x512xf32> to vector<8x128xf32>
    %304 = arith.negf %303 : vector<8x128xf32>
    %305 = math.exp %304 : vector<8x128xf32>
    %cst_70 = arith.constant 1.000000e+00 : f32
    %306 = vector.broadcast %cst_70 : f32 to vector<8x128xf32>
    %307 = arith.addf %306, %305 : vector<8x128xf32>
    %308 = arith.divf %306, %307 : vector<8x128xf32>
    %309 = vector.extract_strided_slice %294 {offsets = [0, 256], sizes = [8, 128], strides = [1, 1]} : vector<8x512xf32> to vector<8x128xf32>
    %310 = math.tanh %309 : vector<8x128xf32>
    %311 = vector.extract_strided_slice %294 {offsets = [0, 384], sizes = [8, 128], strides = [1, 1]} : vector<8x512xf32> to vector<8x128xf32>
    %312 = arith.negf %311 : vector<8x128xf32>
    %313 = math.exp %312 : vector<8x128xf32>
    %cst_71 = arith.constant 1.000000e+00 : f32
    %314 = vector.broadcast %cst_71 : f32 to vector<8x128xf32>
    %315 = arith.addf %314, %313 : vector<8x128xf32>
    %316 = arith.divf %314, %315 : vector<8x128xf32>
    %317 = arith.mulf %308, %265 : vector<8x128xf32>
    %318 = arith.mulf %302, %310 : vector<8x128xf32>
    %319 = arith.addf %317, %318 : vector<8x128xf32>
    %320 = math.tanh %319 : vector<8x128xf32>
    %321 = arith.mulf %316, %320 : vector<8x128xf32>
    %322 = vector.extract_strided_slice %296 {offsets = [0, 0], sizes = [8, 128], strides = [1, 1]} : vector<8x512xf32> to vector<8x128xf32>
    %323 = arith.negf %322 : vector<8x128xf32>
    %324 = math.exp %323 : vector<8x128xf32>
    %cst_72 = arith.constant 1.000000e+00 : f32
    %325 = vector.broadcast %cst_72 : f32 to vector<8x128xf32>
    %326 = arith.addf %325, %324 : vector<8x128xf32>
    %327 = arith.divf %325, %326 : vector<8x128xf32>
    %328 = vector.extract_strided_slice %296 {offsets = [0, 128], sizes = [8, 128], strides = [1, 1]} : vector<8x512xf32> to vector<8x128xf32>
    %329 = arith.negf %328 : vector<8x128xf32>
    %330 = math.exp %329 : vector<8x128xf32>
    %cst_73 = arith.constant 1.000000e+00 : f32
    %331 = vector.broadcast %cst_73 : f32 to vector<8x128xf32>
    %332 = arith.addf %331, %330 : vector<8x128xf32>
    %333 = arith.divf %331, %332 : vector<8x128xf32>
    %334 = vector.extract_strided_slice %296 {offsets = [0, 256], sizes = [8, 128], strides = [1, 1]} : vector<8x512xf32> to vector<8x128xf32>
    %335 = math.tanh %334 : vector<8x128xf32>
    %336 = vector.extract_strided_slice %296 {offsets = [0, 384], sizes = [8, 128], strides = [1, 1]} : vector<8x512xf32> to vector<8x128xf32>
    %337 = arith.negf %336 : vector<8x128xf32>
    %338 = math.exp %337 : vector<8x128xf32>
    %cst_74 = arith.constant 1.000000e+00 : f32
    %339 = vector.broadcast %cst_74 : f32 to vector<8x128xf32>
    %340 = arith.addf %339, %338 : vector<8x128xf32>
    %341 = arith.divf %339, %340 : vector<8x128xf32>
    %342 = arith.mulf %333, %271 : vector<8x128xf32>
    %343 = arith.mulf %327, %335 : vector<8x128xf32>
    %344 = arith.addf %342, %343 : vector<8x128xf32>
    %345 = math.tanh %344 : vector<8x128xf32>
    %346 = arith.mulf %341, %345 : vector<8x128xf32>
    %347 = vector.broadcast %c3_i32_61 : i32 to vector<8x1xi32>
    %348 = arith.cmpi slt, %347, %7 : vector<8x1xi32>
    %349 = vector.broadcast %284 : i32 to vector<8x1xi32>
    %350 = arith.cmpi slt, %349, %7 : vector<8x1xi32>
    %351 = vector.shape_cast %348 : vector<8x1xi1> to vector<8x1xi1>
    %352 = vector.broadcast %351 : vector<8x1xi1> to vector<8x128xi1>
    %353 = arith.select %352, %321, %262 : vector<8x128xi1>, vector<8x128xf32>
    %354 = vector.shape_cast %348 : vector<8x1xi1> to vector<8x1xi1>
    %355 = vector.broadcast %354 : vector<8x1xi1> to vector<8x128xi1>
    %356 = arith.select %355, %319, %265 : vector<8x128xi1>, vector<8x128xf32>
    %357 = vector.shape_cast %350 : vector<8x1xi1> to vector<8x1xi1>
    %358 = vector.broadcast %357 : vector<8x1xi1> to vector<8x128xi1>
    %359 = arith.select %358, %346, %268 : vector<8x128xi1>, vector<8x128xf32>
    %360 = vector.shape_cast %350 : vector<8x1xi1> to vector<8x1xi1>
    %361 = vector.broadcast %360 : vector<8x1xi1> to vector<8x128xi1>
    %362 = arith.select %361, %344, %271 : vector<8x128xi1>, vector<8x128xf32>
    %cst_75 = arith.constant 0.000000e+00 : f32
    %363 = vector.shape_cast %348 : vector<8x1xi1> to vector<8x1xi1>
    %364 = vector.broadcast %363 : vector<8x1xi1> to vector<8x128xi1>
    %365 = vector.broadcast %cst_75 : f32 to vector<8x128xf32>
    %366 = arith.select %364, %321, %365 : vector<8x128xi1>, vector<8x128xf32>
    %367 = arith.index_cast %286 : i32 to index
    %c0_76 = arith.constant 0 : index
    %368 = vector.load %arg6[%367, %c0_76] : memref<32x256xf32, #tpu.memory_space<vmem>>, vector<8x128xf32>
    tpu.vector_store %arg6[%367, %c0_76], %366 {strides = array<i32>} : memref<32x256xf32, #tpu.memory_space<vmem>>, vector<8x128xf32>,
    %cst_77 = arith.constant 0.000000e+00 : f32
    %369 = vector.shape_cast %350 : vector<8x1xi1> to vector<8x1xi1>
    %370 = vector.broadcast %369 : vector<8x1xi1> to vector<8x128xi1>
    %371 = vector.broadcast %cst_77 : f32 to vector<8x128xf32>
    %372 = arith.select %370, %346, %371 : vector<8x128xi1>, vector<8x128xf32>
    %373 = arith.index_cast %288 : i32 to index
    %c128_78 = arith.constant 128 : index
    %374 = vector.load %arg6[%373, %c128_78] : memref<32x256xf32, #tpu.memory_space<vmem>>, vector<8x128xf32>
    tpu.vector_store %arg6[%373, %c128_78], %372 {strides = array<i32>} : memref<32x256xf32, #tpu.memory_space<vmem>>, vector<8x128xf32>,
    %c4_i32 = arith.constant 4 : i32
    return
  }
}

</mosaic_0001>

<bundles_post_ra>
// kernel: pblstm_forward.1
= control target key start
LH: loop header
LB: loop body
LE: loop exit
PB: predicated region body
PF: predicated region fallthrough
CT: control target
= control target key end

     0   :  { %v4518_v3 = vmov 0.0   ;;  %v4516_v26 = vmov 0   ;;  %s4509_s2 = inlined_call_operand.vmem [shape: f32[128,1024], index: 2, kind: input, shape index: {}]   ;;  %s4510_s1 = inlined_call_operand.vmem [shape: f32[32,128], index: 1, kind: input, shape index: {}]   ;;  %s4511_s4 = inlined_call_operand.vmem [shape: f32[128,512], index: 4, kind: input, shape index: {}]   ;;  %s4512_s0 = inlined_call_operand.vmem [shape: s32[8,1], index: 0, kind: input, shape index: {}]   ;;  %s4513_s5 = inlined_call_operand.vmem [shape: f32[128,512], index: 5, kind: input, shape index: {}]   ;;  %s4514_s3 = inlined_call_operand.vmem [shape: f32[1,1024], index: 3, kind: input, shape index: {}]   ;;  %s4515_s6 = inlined_call_operand.vmem [shape: f32[32,256], index: 6, kind: output, shape index: {}]  }
   0x1   :  { %v28_v0 = vld [vmem:[%s4509_s2 + $0x8] sm:$0xff]  ;;  %v30_v2 = vld [vmem:[%s4509_s2 + $0x18] sm:$0xff]  ;;  %261 = vmatprep.mubr.f32.mxu0 %v4518_v3  ;;  %350 = vmatprep.mubr.f32.mxu1 %v4518_v3  ;;  %v27_v6 = vld [vmem:[%s4509_s2] sm:$0xff] }
   0x2   :  { %v36_v1 = vld [vmem:[%s4509_s2 + $0x48] sm:$0xff]  ;;  %v38_v5 = vld [vmem:[%s4509_s2 + $0x58] sm:$0xff]  ;;  %v35_v7 = vld [vmem:[%s4509_s2 + $0x40] sm:$0xff]  ;;  %2930 = vset.pattern.permute.xlu0 %v4516_v26  ;;  %2931 = vset.pattern.permute.xlu1 %v4516_v26 }
   0x3   :  { %v2224_v4 = vpack.c.bf16 %v36_v1, %v28_v0  ;;  %v2256_v8 = vpack.c.bf16 %v38_v5, %v30_v2  ;;  %v2226_v9 = vpack.c.bf16 %v35_v7, %v27_v6  ;;  %v29_v10 = vld [vmem:[%s4509_s2 + $0x10] sm:$0xff]  ;;  %v44_v12 = vld [vmem:[%s4509_s2 + $0x88] sm:$0xff]  ;;  %v46_v15 = vld [vmem:[%s4509_s2 + $0x98] sm:$0xff] }
   0x4   :  { %v37_v11 = vld [vmem:[%s4509_s2 + $0x50] sm:$0xff]  ;;  %v52_v14 = vld [vmem:[%s4509_s2 + $0xc8] sm:$0xff]  ;;  %v54_v16 = vld [vmem:[%s4509_s2 + $0xd8] sm:$0xff] }
   0x5   :  { %2225 = vmatprep.subr.bf16.mxu0 %v2224_v4  ;;  %v2258_v13 = vpack.c.bf16 %v37_v11, %v29_v10  ;;  %2257 = vmatprep.subr.bf16.mxu1 %v2256_v8  ;;  %v2228_v17 = vpack.c.bf16 %v52_v14, %v44_v12  ;;  %v2260_v18 = vpack.c.bf16 %v54_v16, %v46_v15  ;;  %v43_v19 = vld [vmem:[%s4509_s2 + $0x80] sm:$0xff]  ;;  %v45_v21 = vld [vmem:[%s4509_s2 + $0x90] sm:$0xff]  ;;  %v60_v24 = vld [vmem:[%s4509_s2 + $0x108] sm:$0xff] }
   0x6   :  { %2227 = vmatpush1.bf16.msra.mxu0 %v2226_v9  ;;  %v51_v20 = vld [vmem:[%s4509_s2 + $0xc0] sm:$0xff]  ;;  %v53_v23 = vld [vmem:[%s4509_s2 + $0xd0] sm:$0xff]  ;;  %v68_v25 = vld [vmem:[%s4509_s2 + $0x148] sm:$0xff] }
   0x7   :  { %2259 = vmatpush1.bf16.msra.mxu1 %v2258_v13  ;;  %v2230_v22 = vpack.c.bf16 %v51_v20, %v43_v19  ;;  %2229 = vmatprep.subr.bf16.mxu0 %v2228_v17  ;;  %v2262_v27 = vpack.c.bf16 %v53_v23, %v45_v21  ;;  %v2232_v28 = vpack.c.bf16 %v68_v25, %v60_v24  ;;  %v62_v29 = vld [vmem:[%s4509_s2 + $0x118] sm:$0xff]  ;;  %v59_v31 = vld [vmem:[%s4509_s2 + $0x100] sm:$0xff]  ;;  %v61_v34 = vld [vmem:[%s4509_s2 + $0x110] sm:$0xff] }
   0x8   :  { %2261 = vmatprep.subr.bf16.mxu1 %v2260_v18  ;;  %v70_v30 = vld [vmem:[%s4509_s2 + $0x158] sm:$0xff]  ;;  %v67_v33 = vld [vmem:[%s4509_s2 + $0x140] sm:$0xff]  ;;  %v69_v35 = vld [vmem:[%s4509_s2 + $0x150] sm:$0xff] }
   0x9   :  { %v2264_v32 = vpack.c.bf16 %v70_v30, %v62_v29  ;;  %v2234_v36 = vpack.c.bf16 %v67_v33, %v59_v31  ;;  %v76_v37 = vld [vmem:[%s4509_s2 + $0x188] sm:$0xff]  ;;  %v78_v39 = vld [vmem:[%s4509_s2 + $0x198] sm:$0xff]  ;;  %v2266_v40 = vpack.c.bf16 %v69_v35, %v61_v34  ;;  %v75_v43 = vld [vmem:[%s4509_s2 + $0x180] sm:$0xff] }
   0xa   :  { %2231 = vmatpush1.bf16.msra.mxu0 %v2230_v22  ;;  %v84_v38 = vld [vmem:[%s4509_s2 + $0x1c8] sm:$0xff]  ;;  %v86_v42 = vld [vmem:[%s4509_s2 + $0x1d8] sm:$0xff]  ;;  %v83_v44 = vld [vmem:[%s4509_s2 + $0x1c0] sm:$0xff] }
   0xb   :  { %2263 = vmatpush1.bf16.msra.mxu1 %v2262_v27  ;;  %2233 = vmatprep.subr.bf16.mxu0 %v2232_v28  ;;  %v2236_v41 = vpack.c.bf16 %v84_v38, %v76_v37  ;;  %v2268_v45 = vpack.c.bf16 %v86_v42, %v78_v39  ;;  %v77_v46 = vld [vmem:[%s4509_s2 + $0x190] sm:$0xff]  ;;  %v92_v48 = vld [vmem:[%s4509_s2 + $0x208] sm:$0xff]  ;;  %v94_v50 = vld [vmem:[%s4509_s2 + $0x218] sm:$0xff]  ;;  %v2238_v52 = vpack.c.bf16 %v83_v44, %v75_v43 }
   0xc   :  { %2265 = vmatprep.subr.bf16.mxu1 %v2264_v32  ;;  %v85_v47 = vld [vmem:[%s4509_s2 + $0x1d0] sm:$0xff]  ;;  %v100_v49 = vld [vmem:[%s4509_s2 + $0x248] sm:$0xff]  ;;  %v102_v51 = vld [vmem:[%s4509_s2 + $0x258] sm:$0xff] }
   0xd   :  { %v2270_v53 = vpack.c.bf16 %v85_v47, %v77_v46  ;;  %v2240_v54 = vpack.c.bf16 %v100_v49, %v92_v48  ;;  %v91_v55 = vld [vmem:[%s4509_s2 + $0x200] sm:$0xff]  ;;  %v93_v57 = vld [vmem:[%s4509_s2 + $0x210] sm:$0xff]  ;;  %v2272_v58 = vpack.c.bf16 %v102_v51, %v94_v50  ;;  %v108_v60 = vld [vmem:[%s4509_s2 + $0x288] sm:$0xff] }
   0xe   :  { %2235 = vmatpush1.bf16.msra.mxu0 %v2234_v36  ;;  %v99_v56 = vld [vmem:[%s4509_s2 + $0x240] sm:$0xff]  ;;  %v101_v59 = vld [vmem:[%s4509_s2 + $0x250] sm:$0xff]  ;;  %v116_v61 = vld [vmem:[%s4509_s2 + $0x2c8] sm:$0xff] }
   0xf   :  { %2267 = vmatpush1.bf16.msra.mxu1 %v2266_v40  ;;  %2237 = vmatprep.subr.bf16.mxu0 %v2236_v41  ;;  %v110_v62 = vld [vmem:[%s4509_s2 + $0x298] sm:$0xff]  ;;  %v2242_v0 = vpack.c.bf16 %v99_v56, %v91_v55  ;;  %v2274_v1 = vpack.c.bf16 %v101_v59, %v93_v57  ;;  %v2244_v2 = vpack.c.bf16 %v116_v61, %v108_v60  ;;  %v107_v4 = vld [vmem:[%s4509_s2 + $0x280] sm:$0xff]  ;;  %v109_v6 = vld [vmem:[%s4509_s2 + $0x290] sm:$0xff] }
  0x10   :  { %2269 = vmatprep.subr.bf16.mxu1 %v2268_v45  ;;  %v118_v63 = vld [vmem:[%s4509_s2 + $0x2d8] sm:$0xff]  ;;  %v115_v5 = vld [vmem:[%s4509_s2 + $0x2c0] sm:$0xff]  ;;  %v117_v8 = vld [vmem:[%s4509_s2 + $0x2d0] sm:$0xff] }
  0x11   :  { %v2276_v7 = vpack.c.bf16 %v118_v63, %v110_v62  ;;  %v124_v9 = vld [vmem:[%s4509_s2 + $0x308] sm:$0xff]  ;;  %v126_v11 = vld [vmem:[%s4509_s2 + $0x318] sm:$0xff]  ;;  %v2246_v13 = vpack.c.bf16 %v115_v5, %v107_v4  ;;  %v2278_v14 = vpack.c.bf16 %v117_v8, %v109_v6  ;;  %v123_v16 = vld [vmem:[%s4509_s2 + $0x300] sm:$0xff] }
  0x12   :  { %2239 = vmatpush1.bf16.msra.mxu0 %v2238_v52  ;;  %v132_v10 = vld [vmem:[%s4509_s2 + $0x348] sm:$0xff]  ;;  %v134_v12 = vld [vmem:[%s4509_s2 + $0x358] sm:$0xff]  ;;  %v131_v17 = vld [vmem:[%s4509_s2 + $0x340] sm:$0xff] }
  0x13   :  { %2271 = vmatpush1.bf16.msra.mxu1 %v2270_v53  ;;  %2241 = vmatprep.subr.bf16.mxu0 %v2240_v54  ;;  %v2248_v15 = vpack.c.bf16 %v132_v10, %v124_v9  ;;  %v125_v18 = vld [vmem:[%s4509_s2 + $0x310] sm:$0xff]  ;;  %v2280_v19 = vpack.c.bf16 %v134_v12, %v126_v11  ;;  %v140_v21 = vld [vmem:[%s4509_s2 + $0x388] sm:$0xff]  ;;  %v142_v23 = vld [vmem:[%s4509_s2 + $0x398] sm:$0xff]  ;;  %v2250_v25 = vpack.c.bf16 %v131_v17, %v123_v16 }
  0x14   :  { %2273 = vmatprep.subr.bf16.mxu1 %v2272_v58  ;;  %v133_v20 = vld [vmem:[%s4509_s2 + $0x350] sm:$0xff]  ;;  %v148_v22 = vld [vmem:[%s4509_s2 + $0x3c8] sm:$0xff]  ;;  %v150_v24 = vld [vmem:[%s4509_s2 + $0x3d8] sm:$0xff] }
  0x15   :  { %v2282_v27 = vpack.c.bf16 %v133_v20, %v125_v18  ;;  %v2252_v28 = vpack.c.bf16 %v148_v22, %v140_v21  ;;  %v139_v29 = vld [vmem:[%s4509_s2 + $0x380] sm:$0xff]  ;;  %v141_v31 = vld [vmem:[%s4509_s2 + $0x390] sm:$0xff]  ;;  %v2284_v32 = vpack.c.bf16 %v150_v24, %v142_v23  ;;  %v32_v34 = vld [vmem:[%s4509_s2 + $0x28] sm:$0xff] }
  0x16   :  { %2243 = vmatpush1.bf16.msra.mxu0 %v2242_v0  ;;  %v147_v30 = vld [vmem:[%s4509_s2 + $0x3c0] sm:$0xff]  ;;  %v149_v33 = vld [vmem:[%s4509_s2 + $0x3d0] sm:$0xff]  ;;  %v40_v35 = vld [vmem:[%s4509_s2 + $0x68] sm:$0xff] }
  0x17   :  { %2275 = vmatpush1.bf16.msra.mxu1 %v2274_v1  ;;  %2245 = vmatprep.subr.bf16.mxu0 %v2244_v2  ;;  %v34_v36 = vld [vmem:[%s4509_s2 + $0x38] sm:$0xff]  ;;  %v2254_v38 = vpack.c.bf16 %v147_v30, %v139_v29  ;;  %v2286_v39 = vpack.c.bf16 %v149_v33, %v141_v31  ;;  %v2288_v40 = vpack.c.bf16 %v40_v35, %v32_v34  ;;  %v31_v41 = vld [vmem:[%s4509_s2 + $0x20] sm:$0xff]  ;;  %v33_v43 = vld [vmem:[%s4509_s2 + $0x30] sm:$0xff] }
  0x18   :  { %2277 = vmatprep.subr.bf16.mxu1 %v2276_v7  ;;  %v42_v37 = vld [vmem:[%s4509_s2 + $0x78] sm:$0xff]  ;;  %v39_v42 = vld [vmem:[%s4509_s2 + $0x60] sm:$0xff]  ;;  %v41_v45 = vld [vmem:[%s4509_s2 + $0x70] sm:$0xff] }
  0x19   :  { %v2320_v44 = vpack.c.bf16 %v42_v37, %v34_v36  ;;  %v48_v46 = vld [vmem:[%s4509_s2 + $0xa8] sm:$0xff]  ;;  %v50_v48 = vld [vmem:[%s4509_s2 + $0xb8] sm:$0xff]  ;;  %v3332_v50 = vld [vmem:[%s4510_s1] sm:$0xff]  ;;  %v2290_v51 = vpack.c.bf16 %v39_v42, %v31_v41  ;;  %v2322_v52 = vpack.c.bf16 %v41_v45, %v33_v43 }
  0x1a   :  { %2247 = vmatpush1.bf16.msra.mxu0 %v2246_v13  ;;  %v56_v47 = vld [vmem:[%s4509_s2 + $0xe8] sm:$0xff]  ;;  %v58_v49 = vld [vmem:[%s4509_s2 + $0xf8] sm:$0xff]  ;;  %v47_v54 = vld [vmem:[%s4509_s2 + $0xa0] sm:$0xff] }
  0x1b   :  { %2279 = vmatpush1.bf16.msra.mxu1 %v2278_v14  ;;  %2249 = vmatprep.subr.bf16.mxu0 %v2248_v15  ;;  %v2292_v53 = vpack.c.bf16 %v56_v47, %v48_v46  ;;  %v55_v55 = vld [vmem:[%s4509_s2 + $0xe0] sm:$0xff]  ;;  %v49_v56 = vld [vmem:[%s4509_s2 + $0xb0] sm:$0xff]  ;;  %v2324_v57 = vpack.c.bf16 %v58_v49, %v50_v48  ;;  %v64_v59 = vld [vmem:[%s4509_s2 + $0x128] sm:$0xff] }
  0x1c   :  { %2281 = vmatprep.subr.bf16.mxu1 %v2280_v19  ;;  %v57_v58 = vld [vmem:[%s4509_s2 + $0xf0] sm:$0xff]  ;;  %v72_v60 = vld [vmem:[%s4509_s2 + $0x168] sm:$0xff]  ;;  %v66_v61 = vld [vmem:[%s4509_s2 + $0x138] sm:$0xff]  ;;  %v2294_v63 = vpack.c.bf16 %v55_v55, %v47_v54 }
  0x1d   :  { %v74_v62 = vld [vmem:[%s4509_s2 + $0x178] sm:$0xff]  ;;  %v3363_v0 = vld [vmem:[%s4510_s1 + $0x8] sm:$0xff]  ;;  %v2326_v1 = vpack.c.bf16 %v57_v58, %v49_v56  ;;  %v2296_v2 = vpack.c.bf16 %v72_v60, %v64_v59  ;;  %v63_v4 = vld [vmem:[%s4509_s2 + $0x120] sm:$0xff] }
  0x1e   :  { %2251 = vmatpush1.bf16.msra.mxu0 %v2250_v25  ;;  %v71_v5 = vld [vmem:[%s4509_s2 + $0x160] sm:$0xff]  ;;  %v65_v6 = vld [vmem:[%s4509_s2 + $0x130] sm:$0xff]  ;;  %v2328_v7 = vpack.c.bf16 %v74_v62, %v66_v61  ;;  %v80_v9 = vld [vmem:[%s4509_s2 + $0x1a8] sm:$0xff] }
  0x1f   :  { %2283 = vmatpush1.bf16.msra.mxu1 %v2282_v27  ;;  %2253 = vmatprep.subr.bf16.mxu0 %v2252_v28  ;;  %v73_v8 = vld [vmem:[%s4509_s2 + $0x170] sm:$0xff]  ;;  %v88_v10 = vld [vmem:[%s4509_s2 + $0x1e8] sm:$0xff]  ;;  %v82_v11 = vld [vmem:[%s4509_s2 + $0x1b8] sm:$0xff]  ;;  %v2298_v13 = vpack.c.bf16 %v71_v5, %v63_v4 }
  0x20   :  { %2285 = vmatprep.subr.bf16.mxu1 %v2284_v32  ;;  %v90_v12 = vld [vmem:[%s4509_s2 + $0x1f8] sm:$0xff]  ;;  %v3396_v14 = vld [vmem:[%s4510_s1 + $0x10] sm:$0xff]  ;;  %v2330_v15 = vpack.c.bf16 %v73_v8, %v65_v6  ;;  %v2300_v16 = vpack.c.bf16 %v88_v10, %v80_v9  ;;  %v79_v17 = vld [vmem:[%s4509_s2 + $0x1a0] sm:$0xff] }
  0x21   :  { %v87_v18 = vld [vmem:[%s4509_s2 + $0x1e0] sm:$0xff]  ;;  %v81_v19 = vld [vmem:[%s4509_s2 + $0x1b0] sm:$0xff]  ;;  %v2332_v20 = vpack.c.bf16 %v90_v12, %v82_v11  ;;  %v96_v22 = vld [vmem:[%s4509_s2 + $0x228] sm:$0xff] }
  0x22   :  { %2255 = vmatpush1.bf16.msra.mxu0 %v2254_v38  ;;  %v89_v21 = vld [vmem:[%s4509_s2 + $0x1f0] sm:$0xff]  ;;  %v104_v23 = vld [vmem:[%s4509_s2 + $0x268] sm:$0xff]  ;;  %v98_v24 = vld [vmem:[%s4509_s2 + $0x238] sm:$0xff]  ;;  %v2302_v27 = vpack.c.bf16 %v87_v18, %v79_v17 }
  0x23   :  { %2287 = vmatpush1.bf16.msra.mxu1 %v2286_v39  ;;  %2289 = vmatprep.subr.bf16.mxu0 %v2288_v40  ;;  %v106_v25 = vld [vmem:[%s4509_s2 + $0x278] sm:$0xff]  ;;  %v2334_v29 = vpack.c.bf16 %v89_v21, %v81_v19  ;;  %v2304_v30 = vpack.c.bf16 %v104_v23, %v96_v22  ;;  %v95_v31 = vld [vmem:[%s4509_s2 + $0x220] sm:$0xff]  ;;  %v97_v33 = vld [vmem:[%s4509_s2 + $0x230] sm:$0xff] }
  0x24   :  { %2321 = vmatprep.subr.bf16.mxu1 %v2320_v44  ;;  %v3429_v28 = vld [vmem:[%s4510_s1 + $0x18] sm:$0xff]  ;;  %v103_v32 = vld [vmem:[%s4509_s2 + $0x260] sm:$0xff]  ;;  %v2336_v34 = vpack.c.bf16 %v106_v25, %v98_v24  ;;  %v105_v35 = vld [vmem:[%s4509_s2 + $0x270] sm:$0xff] }
  0x25   :  { %262 = vmatmul.mubr.f32.vlgmr.msra.gmra.mrb[0].mxu0 %v3332_v50  ;;  %v112_v36 = vld [vmem:[%s4509_s2 + $0x2a8] sm:$0xff]  ;;  %v114_v38 = vld [vmem:[%s4509_s2 + $0x2b8] sm:$0xff]  ;;  %v2306_v40 = vpack.c.bf16 %v103_v32, %v95_v31  ;;  %v2338_v41 = vpack.c.bf16 %v105_v35, %v97_v33  ;;  %v111_v43 = vld [vmem:[%s4509_s2 + $0x2a0] sm:$0xff] }
  0x26   :  { %351 = vmatmul.mubr.f32.vlgmr.msra.gmra.mrb[0].mxu1 %v3332_v50  ;;  %2291 = vmatpush1.bf16.msra.mxu0 %v2290_v51  ;;  %v120_v37 = vld [vmem:[%s4509_s2 + $0x2e8] sm:$0xff]  ;;  %v122_v39 = vld [vmem:[%s4509_s2 + $0x2f8] sm:$0xff]  ;;  %v119_v44 = vld [vmem:[%s4509_s2 + $0x2e0] sm:$0xff] }
  0x27   :  { %2323 = vmatpush1.bf16.msra.mxu1 %v2322_v52  ;;  %2293 = vmatprep.subr.bf16.mxu0 %v2292_v53  ;;  %v2308_v42 = vpack.c.bf16 %v120_v37, %v112_v36  ;;  %v113_v45 = vld [vmem:[%s4509_s2 + $0x2b0] sm:$0xff]  ;;  %v2340_v46 = vpack.c.bf16 %v122_v39, %v114_v38  ;;  %v128_v48 = vld [vmem:[%s4509_s2 + $0x328] sm:$0xff]  ;;  %v130_v51 = vld [vmem:[%s4509_s2 + $0x338] sm:$0xff]  ;;  %v2310_v53 = vpack.c.bf16 %v119_v44, %v111_v43 }
  0x28   :  { %2325 = vmatprep.subr.bf16.mxu1 %v2324_v57  ;;  %267 = vmatprep.mubr.f32.mxu0 %v4518_v3  ;;  %v121_v47 = vld [vmem:[%s4509_s2 + $0x2f0] sm:$0xff]  ;;  %v136_v49 = vld [vmem:[%s4509_s2 + $0x368] sm:$0xff]  ;;  %v138_v52 = vld [vmem:[%s4509_s2 + $0x378] sm:$0xff] }
  0x29   :  { %356 = vmatprep.mubr.f32.mxu1 %v4518_v3  ;;  %268 = vmatmul.mubr.f32.gmra.mrb[2].mxu0 %v3363_v0  ;;  %v2342_v54 = vpack.c.bf16 %v121_v47, %v113_v45  ;;  %v2312_v55 = vpack.c.bf16 %v136_v49, %v128_v48  ;;  %v127_v56 = vld [vmem:[%s4509_s2 + $0x320] sm:$0xff]  ;;  %v129_v58 = vld [vmem:[%s4509_s2 + $0x330] sm:$0xff]  ;;  %v2344_v59 = vpack.c.bf16 %v138_v52, %v130_v51  ;;  %v144_v61 = vld [vmem:[%s4509_s2 + $0x3a8] sm:$0xff] }
  0x2a   :  { %2295 = vmatpush1.bf16.msra.mxu0 %v2294_v63  ;;  %357 = vmatmul.mubr.f32.gmra.mrb[2].mxu1 %v3363_v0  ;;  %v135_v57 = vld [vmem:[%s4509_s2 + $0x360] sm:$0xff]  ;;  %v137_v60 = vld [vmem:[%s4509_s2 + $0x370] sm:$0xff]  ;;  %v152_v62 = vld [vmem:[%s4509_s2 + $0x3e8] sm:$0xff] }
  0x2b   :  { %2327 = vmatpush1.bf16.msra.mxu1 %v2326_v1  ;;  %2297 = vmatprep.subr.bf16.mxu0 %v2296_v2  ;;  %v146_v63 = vld [vmem:[%s4509_s2 + $0x3b8] sm:$0xff]  ;;  %v2314_v2 = vpack.c.bf16 %v135_v57, %v127_v56  ;;  %v2346_v4 = vpack.c.bf16 %v137_v60, %v129_v58  ;;  %v2316_v5 = vpack.c.bf16 %v152_v62, %v144_v61  ;;  %v143_v6 = vld [vmem:[%s4509_s2 + $0x3a0] sm:$0xff]  ;;  %v145_v8 = vld [vmem:[%s4509_s2 + $0x3b0] sm:$0xff] }
  0x2c   :  { %2329 = vmatprep.subr.bf16.mxu1 %v2328_v7  ;;  %273 = vmatprep.mubr.f32.mxu0 %v4518_v3  ;;  %v154_v1 = vld [vmem:[%s4509_s2 + $0x3f8] sm:$0xff]  ;;  %v151_v7 = vld [vmem:[%s4509_s2 + $0x3e0] sm:$0xff]  ;;  %v153_v10 = vld [vmem:[%s4509_s2 + $0x3f0] sm:$0xff] }
  0x2d   :  { %362 = vmatprep.mubr.f32.mxu1 %v4518_v3  ;;  %274 = vmatmul.mubr.f32.gmra.mrb[4].mxu0 %v3396_v14  ;;  %v2348_v9 = vpack.c.bf16 %v154_v1, %v146_v63  ;;  %v587_v11 = vld [vmem:[%s4511_s4 + $0x8] sm:$0xff]  ;;  %v2350_v17 = vpack.c.bf16 %v153_v10, %v145_v8  ;;  %v586_v19 = vld [vmem:[%s4511_s4] sm:$0xff]  ;;  %v588_v21 = vld [vmem:[%s4511_s4 + $0x10] sm:$0xff] }
  0x2e   :  { %2299 = vmatpush1.bf16.msra.mxu0 %v2298_v13  ;;  %363 = vmatmul.mubr.f32.gmra.mrb[4].mxu1 %v3396_v14  ;;  %v591_v12 = vld [vmem:[%s4511_s4 + $0x28] sm:$0xff]  ;;  %v589_v13 = vld [vmem:[%s4511_s4 + $0x18] sm:$0xff]  ;;  %v592_v23 = vld [vmem:[%s4511_s4 + $0x30] sm:$0xff] }
  0x2f   :  { %2331 = vmatpush1.bf16.msra.mxu1 %v2330_v15  ;;  %2301 = vmatprep.subr.bf16.mxu0 %v2300_v16  ;;  %v593_v15 = vld [vmem:[%s4511_s4 + $0x38] sm:$0xff]  ;;  %v2318_v16 = vpack.c.bf16 %v151_v7, %v143_v6  ;;  %v3533_v18 = vpack.c.bf16 %v591_v12, %v587_v11  ;;  %v595_v24 = vld [vmem:[%s4511_s4 + $0x48] sm:$0xff]  ;;  %v3564_v31 = vpack.c.bf16 %v592_v23, %v588_v21  ;;  %v594_v33 = vld [vmem:[%s4511_s4 + $0x40] sm:$0xff] }
  0x30   :  { %2333 = vmatprep.subr.bf16.mxu1 %v2332_v20  ;;  %279 = vmatprep.mubr.f32.mxu0 %v4518_v3  ;;  %v590_v20 = vld [vmem:[%s4511_s4 + $0x20] sm:$0xff]  ;;  %v3544_v22 = vpack.c.bf16 %v593_v15, %v589_v13  ;;  %v599_v25 = vld [vmem:[%s4511_s4 + $0x68] sm:$0xff]  ;;  %v596_v35 = vld [vmem:[%s4511_s4 + $0x50] sm:$0xff] }
  0x31   :  { %368 = vmatprep.mubr.f32.mxu1 %v4518_v3  ;;  %280 = vmatmul.mubr.f32.gmra.mrb[6].mxu0 %v3429_v28  ;;  %v3566_v32 = vpack.c.bf16 %v599_v25, %v595_v24  ;;  %v600_v37 = vld [vmem:[%s4511_s4 + $0x70] sm:$0xff]  ;;  %v603_v38 = vld [vmem:[%s4511_s4 + $0x88] sm:$0xff]  ;;  %v602_v45 = vld [vmem:[%s4511_s4 + $0x80] sm:$0xff] }
  0x32   :  { %2303 = vmatpush1.bf16.msra.mxu0 %v2302_v27  ;;  %369 = vmatmul.mubr.f32.gmra.mrb[6].mxu1 %v3429_v28  ;;  %v597_v27 = vld [vmem:[%s4511_s4 + $0x58] sm:$0xff]  ;;  %v607_v39 = vld [vmem:[%s4511_s4 + $0xa8] sm:$0xff]  ;;  %v3602_v43 = vpack.c.bf16 %v600_v37, %v596_v35  ;;  %v608_v48 = vld [vmem:[%s4511_s4 + $0xb0] sm:$0xff] }
  0x33   :  { %2335 = vmatpush1.bf16.msra.mxu1 %v2334_v29  ;;  %2305 = vmatprep.subr.bf16.mxu0 %v2304_v30  ;;  %v601_v29 = vld [vmem:[%s4511_s4 + $0x78] sm:$0xff]  ;;  %v3561_v30 = vpack.c.bf16 %v590_v20, %v586_v19  ;;  %v3604_v44 = vpack.c.bf16 %v607_v39, %v603_v38  ;;  %v611_v49 = vld [vmem:[%s4511_s4 + $0xc8] sm:$0xff]  ;;  %v610_v57 = vld [vmem:[%s4511_s4 + $0xc0] sm:$0xff] }
  0x34   :  { %2337 = vmatprep.subr.bf16.mxu1 %v2336_v34  ;;  %439 = vmatprep.mubr.f32.mxu0 %v4518_v3  ;;  %v598_v34 = vld [vmem:[%s4511_s4 + $0x60] sm:$0xff]  ;;  %v3578_v36 = vpack.c.bf16 %v601_v29, %v597_v27  ;;  %4590 = vst [vmem:[#allocation4_spill] sm:$0xff] %v3602_v43  ;;  %v615_v51 = vld [vmem:[%s4511_s4 + $0xe8] sm:$0xff]  ;;  %v613_v52 = vld [vmem:[%s4511_s4 + $0xd8] sm:$0xff] }
  0x35   :  { %528 = vmatprep.mubr.f32.mxu1 %v4518_v3  ;;  %4591 = vst [vmem:[#allocation5_spill] sm:$0xff] %v3604_v44  ;;  %v3644_v56 = vpack.c.bf16 %v615_v51, %v611_v49  ;;  %v614_v58 = vld [vmem:[%s4511_s4 + $0xe0] sm:$0xff]  ;;  %v616_v60 = vld [vmem:[%s4511_s4 + $0xf0] sm:$0xff]  ;;  %v619_v61 = vld [vmem:[%s4511_s4 + $0x108] sm:$0xff] }
  0x36   :  { %2307 = vmatpush1.bf16.msra.mxu0 %v2306_v40  ;;  %v605_v40 = vld [vmem:[%s4511_s4 + $0x98] sm:$0xff]  ;;  %v623_v62 = vld [vmem:[%s4511_s4 + $0x128] sm:$0xff]  ;;  %v618_v6 = vld [vmem:[%s4511_s4 + $0x100] sm:$0xff] }
  0x37   :  { %2339 = vmatpush1.bf16.msra.mxu1 %v2338_v41  ;;  %2309 = vmatprep.subr.bf16.mxu0 %v2308_v42  ;;  %v609_v41 = vld [vmem:[%s4511_s4 + $0xb8] sm:$0xff]  ;;  %v3598_v42 = vpack.c.bf16 %v598_v34, %v594_v33  ;;  %4595 = vst [vmem:[#allocation9_spill] sm:$0xff] %v3644_v56  ;;  %v622_v7 = vld [vmem:[%s4511_s4 + $0x120] sm:$0xff]  ;;  %v627_v10 = vld [vmem:[%s4511_s4 + $0x148] sm:$0xff] }
  0x38   :  { %2341 = vmatprep.subr.bf16.mxu1 %v2340_v46  ;;  %v604_v46 = vld [vmem:[%s4511_s4 + $0x90] sm:$0xff]  ;;  %v3616_v47 = vpack.c.bf16 %v609_v41, %v605_v40  ;;  %v621_v63 = vld [vmem:[%s4511_s4 + $0x118] sm:$0xff]  ;;  %v631_v11 = vld [vmem:[%s4511_s4 + $0x168] sm:$0xff]  ;;  %v3717_v15 = vpack.c.bf16 %v622_v7, %v618_v6 }
  0x39   :  { %4589 = vst [vmem:[#allocation3_spill] sm:$0xff] %v3598_v42  ;;  %v625_v1 = vld [vmem:[%s4511_s4 + $0x138] sm:$0xff]  ;;  %v626_v19 = vld [vmem:[%s4511_s4 + $0x140] sm:$0xff]  ;;  %v632_v23 = vld [vmem:[%s4511_s4 + $0x170] sm:$0xff] }
  0x3a   :  { %2311 = vmatpush1.bf16.msra.mxu0 %v2310_v53  ;;  %4592 = vst [vmem:[#allocation6_spill] sm:$0xff] %v3616_v47  ;;  %v617_v53 = vld [vmem:[%s4511_s4 + $0xf8] sm:$0xff]  ;;  %v3696_v8 = vpack.c.bf16 %v625_v1, %v621_v63  ;;  %4601 = vst [vmem:[#allocation15_spill] sm:$0xff] %v3717_v15  ;;  %v630_v20 = vld [vmem:[%s4511_s4 + $0x160] sm:$0xff] }
  0x3b   :  { %2343 = vmatpush1.bf16.msra.mxu1 %v2342_v54  ;;  %2313 = vmatprep.subr.bf16.mxu0 %v2312_v55  ;;  %v3642_v55 = vpack.c.bf16 %v608_v48, %v604_v46  ;;  %v629_v12 = vld [vmem:[%s4511_s4 + $0x158] sm:$0xff]  ;;  %v635_v24 = vld [vmem:[%s4511_s4 + $0x188] sm:$0xff]  ;;  %v3756_v33 = vpack.c.bf16 %v630_v20, %v626_v19  ;;  %v634_v34 = vld [vmem:[%s4511_s4 + $0x180] sm:$0xff] }
  0x3c   :  { %2345 = vmatprep.subr.bf16.mxu1 %v2344_v59  ;;  %v3656_v59 = vpack.c.bf16 %v617_v53, %v613_v52  ;;  %4600 = vst [vmem:[#allocation14_spill] sm:$0xff] %v3696_v8  ;;  %v633_v13 = vld [vmem:[%s4511_s4 + $0x178] sm:$0xff]  ;;  %v639_v25 = vld [vmem:[%s4511_s4 + $0x1a8] sm:$0xff]  ;;  %v638_v38 = vld [vmem:[%s4511_s4 + $0x1a0] sm:$0xff] }
  0x3d   :  { %4594 = vst [vmem:[#allocation8_spill] sm:$0xff] %v3642_v55  ;;  %v3736_v21 = vpack.c.bf16 %v633_v13, %v629_v12  ;;  %v637_v27 = vld [vmem:[%s4511_s4 + $0x198] sm:$0xff]  ;;  %4605 = vst [vmem:[#allocation19_spill] sm:$0xff] %v3756_v33  ;;  %v3765_v37 = vpack.c.bf16 %v639_v25, %v635_v24  ;;  %v636_v39 = vld [vmem:[%s4511_s4 + $0x190] sm:$0xff]  ;;  %v3798_v51 = vpack.c.bf16 %v638_v38, %v634_v34 }
  0x3e   :  { %2315 = vmatpush1.bf16.msra.mxu0 %v2314_v2  ;;  %4596 = vst [vmem:[#allocation10_spill] sm:$0xff] %v3656_v59  ;;  %v3677_v2 = vpack.c.bf16 %v614_v58, %v610_v57  ;;  %v641_v29 = vld [vmem:[%s4511_s4 + $0x1b8] sm:$0xff]  ;;  %v640_v40 = vld [vmem:[%s4511_s4 + $0x1b0] sm:$0xff]  ;;  %v3788_v46 = vld [vmem:[%s4512_s0] sm:$0xff] }
  0x3f   :  { %2347 = vmatpush1.bf16.msra.mxu1 %v2346_v4  ;;  %2317 = vmatprep.subr.bf16.mxu0 %v2316_v5  ;;  %v3684_v5 = vpack.c.bf16 %v623_v62, %v619_v61  ;;  %4604 = vst [vmem:[#allocation18_spill] sm:$0xff] %v3736_v21  ;;  %4607 = vst [vmem:[#allocation21_spill] sm:$0xff] %v3765_v37  ;;  %v3777_v41 = vpack.c.bf16 %v641_v29, %v637_v27  ;;  %v645_v48 = vld [vmem:[%s4511_s4 + $0x1d8] sm:$0xff]  ;;  %vm1068_vm0 = vcmp.gt.s32.totalorder %v3788_v46, 0  ;;  %v642_v58 = vld [vmem:[%s4511_s4 + $0x1c0] sm:$0xff] }
  0x40   :  { %2349 = vmatprep.subr.bf16.mxu1 %v2348_v9  ;;  %4597 = vst [vmem:[#allocation11_spill] sm:$0xff] %v3677_v2  ;;  %v624_v9 = vld [vmem:[%s4511_s4 + $0x130] sm:$0xff]  ;;  %v649_v49 = vld [vmem:[%s4511_s4 + $0x1f8] sm:$0xff]  ;;  %4609 = vst [vmem:[#allocation23_spill] sm:$0xff] %v3798_v51  ;;  %v1070_v52 = vsel %vm1068_vm0, 1, %v4516_v26  ;;  %vm1069_vm1 = vcmp.gt.s32.totalorder %v3788_v46, 3  ;;  %v3804_v53 = vpack.c.bf16 %v640_v40, %v636_v39 }
  0x41   :  { %4599 = vst [vmem:[#allocation13_spill] sm:$0xff] %v3684_v5  ;;  %4608 = vst [vmem:[#allocation22_spill] sm:$0xff] %v3777_v41  ;;  %v3818_v61 = vpack.c.bf16 %v649_v49, %v645_v48  ;;  %v648_v62 = vld [vmem:[%s4511_s4 + $0x1f0] sm:$0xff]  ;;  %v651_v63 = vld [vmem:[%s4513_s5 + $0x8] sm:$0xff]  ;;  %1072 = vperm.xlu0 %2930, %v1070_v52   ;;  %vm1446_vm2 = vcmp.gt.s32.totalorder %v3788_v46, 1  ;;  %vm1447_vm3 = vcmp.gt.s32.totalorder %v3788_v46, 2 }
  0x42   :  { %2319 = vmatpush1.bf16.msra.mxu0 %v2318_v16  ;;  %4610 = vst [vmem:[#allocation24_spill] sm:$0xff] %v3804_v53  ;;  %v655_v1 = vld [vmem:[%s4513_s5 + $0x28] sm:$0xff]  ;;  %v653_v6 = vld [vmem:[%s4513_s5 + $0x18] sm:$0xff]  ;;  %v650_v12 = vld [vmem:[%s4513_s5] sm:$0xff] }
  0x43   :  { %2351 = vmatpush1.bf16.msra.mxu1 %v2350_v17  ;;  %2353 = vmatprep.subr.bf16.mxu0 %v3533_v18  ;;  %v3724_v17 = vpack.c.bf16 %v631_v11, %v627_v10  ;;  %4612 = vst [vmem:[#allocation26_spill] sm:$0xff] %v3818_v61  ;;  %v657_v7 = vld [vmem:[%s4513_s5 + $0x38] sm:$0xff]  ;;  %v3845_v11 = vpack.c.bf16 %v655_v1, %v651_v63  ;;  %v654_v13 = vld [vmem:[%s4513_s5 + $0x20] sm:$0xff]  ;;  %v652_v19 = vld [vmem:[%s4513_s5 + $0x10] sm:$0xff] }
  0x44   :  { %2385 = vmatprep.subr.bf16.mxu1 %v3544_v22  ;;  %v3857_v20 = vpack.c.bf16 %v657_v7, %v653_v6  ;;  %v663_v24 = vld [vmem:[%s4513_s5 + $0x68] sm:$0xff]  ;;  %v661_v25 = vld [vmem:[%s4513_s5 + $0x58] sm:$0xff]  ;;  %v3875_v29 = vpack.c.bf16 %v654_v13, %v650_v12  ;;  %v658_v39 = vld [vmem:[%s4513_s5 + $0x40] sm:$0xff] }
  0x45   :  { %440 = vmatmul.mubr.f32.vlgmr.msra.gmra.mrb[8].mxu0 %v3332_v50  ;;  %4603 = vst [vmem:[#allocation17_spill] sm:$0xff] %v3724_v17  ;;  %4615 = vst [vmem:[#allocation29_spill] sm:$0xff] %v3845_v11  ;;  %v665_v27 = vld [vmem:[%s4513_s5 + $0x78] sm:$0xff]  ;;  %v662_v40 = vld [vmem:[%s4513_s5 + $0x60] sm:$0xff] }
  0x46   :  { %529 = vmatmul.mubr.f32.vlgmr.msra.gmra.mrb[8].mxu1 %v3332_v50  ;;  %2355 = vmatpush1.bf16.msra.mxu0 %v3561_v30  ;;  %v606_v50 = vld [vmem:[%s4511_s4 + $0xa0] sm:$0xff]  ;;  %4616 = vst [vmem:[#allocation30_spill] sm:$0xff] %v3857_v20  ;;  %v664_v48 = vld [vmem:[%s4513_s5 + $0x70] sm:$0xff]  ;;  %v667_v49 = vld [vmem:[%s4513_s5 + $0x88] sm:$0xff] }
  0x47   :  { %2387 = vmatpush1.bf16.msra.mxu1 %v3564_v31  ;;  %2357 = vmatprep.subr.bf16.mxu0 %v3566_v32  ;;  %v3637_v54 = vpack.c.bf16 %v606_v50, %v602_v45  ;;  %v643_v45 = vld [vmem:[%s4511_s4 + $0x1c8] sm:$0xff]  ;;  %v666_v1 = vld [vmem:[%s4513_s5 + $0x80] sm:$0xff]  ;;  %v668_v7 = vld [vmem:[%s4513_s5 + $0x90] sm:$0xff] }
  0x48   :  { %2389 = vmatprep.subr.bf16.mxu1 %v3578_v36  ;;  %445 = vmatprep.mubr.f32.mxu0 %v4518_v3  ;;  %v647_v50 = vld [vmem:[%s4511_s4 + $0x1e8] sm:$0xff]  ;;  %v670_v6 = vld [vmem:[%s4513_s5 + $0xa0] sm:$0xff]  ;;  %v672_v12 = vld [vmem:[%s4513_s5 + $0xb0] sm:$0xff] }
  0x49   :  { %534 = vmatprep.mubr.f32.mxu1 %v4518_v3  ;;  %446 = vmatmul.mubr.f32.gmra.mrb[10].mxu0 %v3363_v0  ;;  %4593 = vst [vmem:[#allocation7_spill] sm:$0xff] %v3637_v54  ;;  %v3806_v57 = vpack.c.bf16 %v647_v50, %v643_v45  ;;  %v660_v45 = vld [vmem:[%s4513_s5 + $0x50] sm:$0xff]  ;;  %v3893_v50 = vpack.c.bf16 %v665_v27, %v661_v25  ;;  %v671_v52 = vld [vmem:[%s4513_s5 + $0xa8] sm:$0xff] }
  0x4a   :  { %2359 = vmatpush1.bf16.msra.mxu0 %v3598_v42  ;;  %535 = vmatmul.mubr.f32.gmra.mrb[10].mxu1 %v3363_v0  ;;  %v612_v0 = vld [vmem:[%s4511_s4 + $0xd0] sm:$0xff]  ;;  %v3919_v63 = vpack.c.bf16 %v671_v52, %v667_v49  ;;  %v675_v13 = vld [vmem:[%s4513_s5 + $0xc8] sm:$0xff]  ;;  %v3955_v25 = vpack.c.bf16 %v672_v12, %v668_v7 }
  0x4b   :  { %2391 = vmatpush1.bf16.msra.mxu1 %v3602_v43  ;;  %2361 = vmatprep.subr.bf16.mxu0 %v3604_v44  ;;  %v3682_v4 = vpack.c.bf16 %v616_v60, %v612_v0  ;;  %4611 = vst [vmem:[#allocation25_spill] sm:$0xff] %v3806_v57  ;;  %v646_v0 = vld [vmem:[%s4511_s4 + $0x1e0] sm:$0xff]  ;;  %v644_v60 = vld [vmem:[%s4511_s4 + $0x1d0] sm:$0xff]  ;;  %v683_v52 = vld [vmem:[%s4513_s5 + $0x108] sm:$0xff] }
  0x4c   :  { %2393 = vmatprep.subr.bf16.mxu1 %v3616_v47  ;;  %451 = vmatprep.mubr.f32.mxu0 %v4518_v3  ;;  %v3843_v10 = vpack.c.bf16 %v648_v62, %v644_v60  ;;  %v3913_v60 = vpack.c.bf16 %v662_v40, %v658_v39  ;;  %v3917_v62 = vpack.c.bf16 %v664_v48, %v660_v45  ;;  %v674_v39 = vld [vmem:[%s4513_s5 + $0xc0] sm:$0xff]  ;;  %v676_v45 = vld [vmem:[%s4513_s5 + $0xd0] sm:$0xff] }
  0x4d   :  { %540 = vmatprep.mubr.f32.mxu1 %v4518_v3  ;;  %452 = vmatmul.mubr.f32.gmra.mrb[12].mxu0 %v3396_v14  ;;  %4598 = vst [vmem:[#allocation12_spill] sm:$0xff] %v3682_v4  ;;  %v678_v40 = vld [vmem:[%s4513_s5 + $0xe0] sm:$0xff]  ;;  %v680_v49 = vld [vmem:[%s4513_s5 + $0xf0] sm:$0xff] }
  0x4e   :  { %2363 = vmatpush1.bf16.msra.mxu0 %v3637_v54  ;;  %541 = vmatmul.mubr.f32.gmra.mrb[12].mxu1 %v3396_v14  ;;  %v620_v14 = vld [vmem:[%s4511_s4 + $0x110] sm:$0xff]  ;;  %4614 = vst [vmem:[#allocation28_spill] sm:$0xff] %v3843_v10  ;;  %v3991_v7 = vpack.c.bf16 %v680_v49, %v676_v45  ;;  %v695_v45 = vld [vmem:[%s4513_s5 + $0x168] sm:$0xff]  ;;  %v693_v49 = vld [vmem:[%s4513_s5 + $0x158] sm:$0xff] }
  0x4f   :  { %2395 = vmatpush1.bf16.msra.mxu1 %v3642_v55  ;;  %2365 = vmatprep.subr.bf16.mxu0 %v3644_v56  ;;  %v3722_v16 = vpack.c.bf16 %v624_v9, %v620_v14  ;;  %v1077_v14 = vsel %vm1069_vm1, 1, %v4516_v26  ;;  %v3839_v9 = vpack.c.bf16 %v646_v0, %v642_v58  ;;  %v669_v58 = vld [vmem:[%s4513_s5 + $0x98] sm:$0xff]  ;;  %v690_v26 = vld [vmem:[%s4513_s5 + $0x140] sm:$0xff] }
  0x50   :  { %2397 = vmatprep.subr.bf16.mxu1 %v3656_v59  ;;  %457 = vmatprep.mubr.f32.mxu0 %v4518_v3  ;;  %v673_v0 = vld [vmem:[%s4513_s5 + $0xb8] sm:$0xff]  ;;  %4618 = vst [vmem:[#allocation32_spill] sm:$0xff] %v3991_v7 }
  0x51   :  { %546 = vmatprep.mubr.f32.mxu1 %v4518_v3  ;;  %458 = vmatmul.mubr.f32.gmra.mrb[14].mxu0 %v3429_v28  ;;  %4602 = vst [vmem:[#allocation16_spill] sm:$0xff] %v3722_v16  ;;  %4613 = vst [vmem:[#allocation27_spill] sm:$0xff] %v3839_v9 }
  0x52   :  { %2367 = vmatpush1.bf16.msra.mxu0 %v3677_v2  ;;  %547 = vmatmul.mubr.f32.gmra.mrb[14].mxu1 %v3429_v28  ;;  %v628_v28 = vld [vmem:[%s4511_s4 + $0x150] sm:$0xff] }
  0x53   :  { %2399 = vmatpush1.bf16.msra.mxu1 %v3682_v4  ;;  %2369 = vmatprep.subr.bf16.mxu0 %v3684_v5  ;;  %v3763_v35 = vpack.c.bf16 %v632_v23, %v628_v28  ;;  %v656_v28 = vld [vmem:[%s4513_s5 + $0x30] sm:$0xff]  ;;  %v659_v23 = vld [vmem:[%s4513_s5 + $0x48] sm:$0xff] }
  0x54   :  { %2401 = vmatprep.subr.bf16.mxu1 %v3696_v8  ;;  %792 = vmatprep.mubr.f32.mxu0 %v4518_v3  ;;  %v3879_v34 = vpack.c.bf16 %v656_v28, %v652_v19  ;;  %v3881_v38 = vpack.c.bf16 %v663_v24, %v659_v23  ;;  %v679_v19 = vld [vmem:[%s4513_s5 + $0xe8] sm:$0xff]  ;;  %v677_v28 = vld [vmem:[%s4513_s5 + $0xd8] sm:$0xff]  ;;  %v3951_v24 = vpack.c.bf16 %v670_v6, %v666_v1 }
  0x55   :  { %863 = vmatprep.mubr.f32.mxu1 %v4518_v3  ;;  %4606 = vst [vmem:[#allocation20_spill] sm:$0xff] %v3763_v35  ;;  %1079 = vperm.xlu0 %2930, %v1077_v14   ;;  %v3931_v14 = vpack.c.bf16 %v673_v0, %v669_v58  ;;  %v681_v23 = vld [vmem:[%s4513_s5 + $0xf8] sm:$0xff]  ;;  %v3957_v27 = vpack.c.bf16 %v679_v19, %v675_v13  ;;  %v687_v58 = vld [vmem:[%s4513_s5 + $0x128] sm:$0xff]  ;;  %v682_v13 = vld [vmem:[%s4513_s5 + $0x100] sm:$0xff] }
  0x56   :  { %2371 = vmatpush1.bf16.msra.mxu0 %v3717_v15  ;;  %v3969_v48 = vpack.c.bf16 %v681_v23, %v677_v28  ;;  %v685_v0 = vld [vmem:[%s4513_s5 + $0x118] sm:$0xff]  ;;  %v3987_v6 = vpack.c.bf16 %v678_v40, %v674_v39  ;;  %v3993_v12 = vpack.c.bf16 %v687_v58, %v683_v52  ;;  %v686_v19 = vld [vmem:[%s4513_s5 + $0x120] sm:$0xff]  ;;  %v684_v28 = vld [vmem:[%s4513_s5 + $0x110] sm:$0xff] }
  0x57   :  { %2403 = vmatpush1.bf16.msra.mxu1 %v3722_v16  ;;  %2373 = vmatprep.subr.bf16.mxu0 %v3724_v17  ;;  %v689_v1 = vld [vmem:[%s4513_s5 + $0x138] sm:$0xff]  ;;  %v688_v39 = vld [vmem:[%s4513_s5 + $0x130] sm:$0xff]  ;;  %v691_v40 = vld [vmem:[%s4513_s5 + $0x148] sm:$0xff]  ;;  %v4023_v58 = vpack.c.bf16 %v686_v19, %v682_v13 }
  0x58   :  { %2405 = vmatprep.subr.bf16.mxu1 %v3736_v21  ;;  %4617 = vst [vmem:[#allocation31_spill] sm:$0xff] %v3987_v6  ;;  %4619 = vst [vmem:[#allocation33_spill] sm:$0xff] %v3993_v12  ;;  %v4005_v23 = vpack.c.bf16 %v689_v1, %v685_v0  ;;  %v697_v52 = vld [vmem:[%s4513_s5 + $0x178] sm:$0xff]  ;;  %v4027_v0 = vpack.c.bf16 %v688_v39, %v684_v28  ;;  %v4029_v1 = vpack.c.bf16 %v695_v45, %v691_v40  ;;  %v692_v13 = vld [vmem:[%s4513_s5 + $0x150] sm:$0xff] }
  0x59   :  { %4621 = vst [vmem:[#allocation35_spill] sm:$0xff] %v4023_v58  ;;  %v4041_v19 = vpack.c.bf16 %v697_v52, %v693_v49  ;;  %v696_v28 = vld [vmem:[%s4513_s5 + $0x170] sm:$0xff]  ;;  %v699_v39 = vld [vmem:[%s4513_s5 + $0x188] sm:$0xff]  ;;  %v701_v45 = vld [vmem:[%s4513_s5 + $0x198] sm:$0xff] }
  0x5a   :  { %2375 = vmatpush1.bf16.msra.mxu0 %v3756_v33  ;;  %4620 = vst [vmem:[#allocation34_spill] sm:$0xff] %v4005_v23  ;;  %4622 = vst [vmem:[#allocation36_spill] sm:$0xff] %v4027_v0  ;;  %v703_v40 = vld [vmem:[%s4513_s5 + $0x1a8] sm:$0xff]  ;;  %v705_v49 = vld [vmem:[%s4513_s5 + $0x1b8] sm:$0xff] }
  0x5b   :  { %2407 = vmatpush1.bf16.msra.mxu1 %v3763_v35  ;;  %2377 = vmatprep.subr.bf16.mxu0 %v3765_v37  ;;  %4623 = vst [vmem:[#allocation37_spill] sm:$0xff] %v4029_v1  ;;  %4624 = vst [vmem:[#allocation38_spill] sm:$0xff] %v4041_v19 }
  0x5c   :  { %2409 = vmatprep.subr.bf16.mxu1 %v3777_v41 }
  0x5e   :  { %2379 = vmatpush1.bf16.msra.mxu0 %v3798_v51 }
  0x5f   :  { %2411 = vmatpush1.bf16.msra.mxu1 %v3804_v53  ;;  %2381 = vmatprep.subr.bf16.mxu0 %v3806_v57 }
  0x60   :  { %2413 = vmatprep.subr.bf16.mxu1 %v3818_v61 }
  0x62   :  { %2383 = vmatpush1.bf16.msra.mxu0 %v3839_v9 }
  0x63   :  { %2415 = vmatpush1.bf16.msra.mxu1 %v3843_v10  ;;  %2417 = vmatprep.subr.bf16.mxu0 %v3845_v11 }
  0x64   :  { %2449 = vmatprep.subr.bf16.mxu1 %v3857_v20 }
  0x65   :  { %793 = vmatmul.mubr.f32.vlgmr.msra.gmra.mrb[0].mxu0 %v4518_v3 }
  0x66   :  { %864 = vmatmul.mubr.f32.vlgmr.msra.gmra.mrb[0].mxu1 %v4518_v3  ;;  %2419 = vmatpush1.bf16.msra.mxu0 %v3875_v29 }
  0x67   :  { %2451 = vmatpush1.bf16.msra.mxu1 %v3879_v34  ;;  %2421 = vmatprep.subr.bf16.mxu0 %v3881_v38 }
  0x68   :  { %2453 = vmatprep.subr.bf16.mxu1 %v3893_v50  ;;  %938 = vmatprep.mubr.f32.mxu0 %v4518_v3 }
  0x69   :  { %1009 = vmatprep.mubr.f32.mxu1 %v4518_v3  ;;  %v694_v3 = vld [vmem:[%s4513_s5 + $0x160] sm:$0xff] }
  0x6a   :  { %2423 = vmatpush1.bf16.msra.mxu0 %v3913_v60  ;;  %v4059_v52 = vpack.c.bf16 %v694_v3, %v690_v26  ;;  %v700_v3 = vld [vmem:[%s4513_s5 + $0x190] sm:$0xff]  ;;  %v4077_v26 = vpack.c.bf16 %v705_v49, %v701_v45  ;;  %v713_v45 = vld [vmem:[%s4513_s5 + $0x1f8] sm:$0xff] }
  0x6b   :  { %2455 = vmatpush1.bf16.msra.mxu1 %v3917_v62  ;;  %2425 = vmatprep.subr.bf16.mxu0 %v3919_v63 }
  0x6c   :  { %2457 = vmatprep.subr.bf16.mxu1 %v3931_v14 }
  0x6e   :  { %2427 = vmatpush1.bf16.msra.mxu0 %v3951_v24 }
  0x6f   :  { %2459 = vmatpush1.bf16.msra.mxu1 %v3955_v25  ;;  %2429 = vmatprep.subr.bf16.mxu0 %v3957_v27 }
  0x70   :  { %2461 = vmatprep.subr.bf16.mxu1 %v3969_v48 }
  0x72   :  { %2431 = vmatpush1.bf16.msra.mxu0 %v3987_v6  ;;  %v702_v6 = vld [vmem:[%s4513_s5 + $0x1a0] sm:$0xff] }
  0x73   :  { %2463 = vmatpush1.bf16.msra.mxu1 %v3991_v7  ;;  %2433 = vmatprep.subr.bf16.mxu0 %v3993_v12  ;;  %v4065_v12 = vpack.c.bf16 %v703_v40, %v699_v39  ;;  %v698_v7 = vld [vmem:[%s4513_s5 + $0x180] sm:$0xff]  ;;  %v711_v39 = vld [vmem:[%s4513_s5 + $0x1e8] sm:$0xff]  ;;  %v709_v40 = vld [vmem:[%s4513_s5 + $0x1d8] sm:$0xff] }
  0x74   :  { %2465 = vmatprep.subr.bf16.mxu1 %v4005_v23  ;;  %v4063_v23 = vpack.c.bf16 %v696_v28, %v692_v13  ;;  %v704_v13 = vld [vmem:[%s4513_s5 + $0x1b0] sm:$0xff]  ;;  %v707_v28 = vld [vmem:[%s4513_s5 + $0x1c8] sm:$0xff]  ;;  %v4095_v49 = vpack.c.bf16 %v702_v6, %v698_v7  ;;  %v4110_v6 = vpack.c.bf16 %v713_v45, %v709_v40  ;;  %v157_v45 = vlaneseq }
  0x75   :  { %v708_v7 = vld [vmem:[%s4513_s5 + $0x1d0] sm:$0xff] }
  0x76   :  { %2435 = vmatpush1.bf16.msra.mxu0 %v4023_v58  ;;  %v710_v58 = vld [vmem:[%s4513_s5 + $0x1e0] sm:$0xff] }
  0x77   :  { %2467 = vmatpush1.bf16.msra.mxu1 %v4027_v0  ;;  %2437 = vmatprep.subr.bf16.mxu0 %v4029_v1  ;;  %v4101_v1 = vpack.c.bf16 %v711_v39, %v707_v28  ;;  %v706_v0 = vld [vmem:[%s4513_s5 + $0x1c0] sm:$0xff]  ;;  %v4625_v39 = vmov 0.0  }
  0x78   :  { %2469 = vmatprep.subr.bf16.mxu1 %v4041_v19  ;;  %v4099_v19 = vpack.c.bf16 %v704_v13, %v700_v3  ;;  %v712_v3 = vld [vmem:[%s4513_s5 + $0x1f0] sm:$0xff]  ;;  %v4119_v13 = vpack.c.bf16 %v710_v58, %v706_v0  ;;  %v4626_v58 = vmov 0  }
  0x79   :  { %v4123_v28 = vpack.c.bf16 %v712_v3, %v708_v7  ;;  %v1448_v0 = vsel %vm1446_vm2, 1, %v4626_v58  ;;  %v1455_v40 = vsel %vm1447_vm3, 1, %v4626_v58  ;;  %v158_v7 = vshrl.u32 %v157_v45, 7 }
  0x7a   :  { %2439 = vmatpush1.bf16.msra.mxu0 %v4059_v52  ;;  %1450 = vperm.xlu1 %2931, %v1448_v0  }
  0x7b   :  { %2471 = vmatpush1.bf16.msra.mxu1 %v4063_v23  ;;  %2441 = vmatprep.subr.bf16.mxu0 %v4065_v12  ;;  %v159_v3 = vsub.s32 0, %v158_v7  ;;  %v171_v46 = vsub.s32 3, %v158_v7 }
  0x7c   :  { %2473 = vmatprep.subr.bf16.mxu1 %v4077_v26 }
  0x7e   :  { %2443 = vmatpush1.bf16.msra.mxu0 %v4095_v49  ;;  %1457 = vperm.xlu1 %2931, %v1455_v40  }
  0x7f   :  { %2475 = vmatpush1.bf16.msra.mxu1 %v4099_v19  ;;  %2445 = vmatprep.subr.bf16.mxu0 %v4101_v1 }
  0x80   :  { %2477 = vmatprep.subr.bf16.mxu1 %v4110_v6 }
  0x82   :  { %2447 = vmatpush1.bf16.msra.mxu0 %v4119_v13 }
  0x83   :  { %2479 = vmatpush1.bf16.msra.mxu1 %v4123_v28  ;;  %2481 = vmatprep.subr.bf16.mxu0 %v3533_v18 }
  0x84   :  { %2513 = vmatprep.subr.bf16.mxu1 %v3544_v22 }
  0x85   :  { %939 = vmatmul.mubr.f32.vlgmr.msra.gmra.mrb[14].mxu0 %v4625_v39 }
  0x86   :  { %1010 = vmatmul.mubr.f32.vlgmr.msra.gmra.mrb[14].mxu1 %v4625_v39  ;;  %2483 = vmatpush1.bf16.msra.mxu0 %v3561_v30 }
  0x87   :  { %2515 = vmatpush1.bf16.msra.mxu1 %v3564_v31  ;;  %2485 = vmatprep.subr.bf16.mxu0 %v3566_v32 }
  0x88   :  { %2517 = vmatprep.subr.bf16.mxu1 %v3578_v36  ;;  %1170 = vmatprep.mubr.f32.mxu0 %v4625_v39 }
  0x89   :  { %1241 = vmatprep.mubr.f32.mxu1 %v4625_v39 }
  0x8a   :  { %2487 = vmatpush1.bf16.msra.mxu0 %v3598_v42 }
  0x8b   :  { %2519 = vmatpush1.bf16.msra.mxu1 %v3602_v43  ;;  %2489 = vmatprep.subr.bf16.mxu0 %v3604_v44 }
  0x8c   :  { %2521 = vmatprep.subr.bf16.mxu1 %v3616_v47 }
  0x8e   :  { %2491 = vmatpush1.bf16.msra.mxu0 %v3637_v54 }
  0x8f   :  { %2523 = vmatpush1.bf16.msra.mxu1 %v3642_v55  ;;  %2493 = vmatprep.subr.bf16.mxu0 %v3644_v56 }
  0x90   :  { %2525 = vmatprep.subr.bf16.mxu1 %v3656_v59 }
  0x92   :  { %2495 = vmatpush1.bf16.msra.mxu0 %v3677_v2 }
  0x93   :  { %2527 = vmatpush1.bf16.msra.mxu1 %v3682_v4  ;;  %2497 = vmatprep.subr.bf16.mxu0 %v3684_v5 }
  0x94   :  { %2529 = vmatprep.subr.bf16.mxu1 %v3696_v8 }
  0x96   :  { %2499 = vmatpush1.bf16.msra.mxu0 %v3717_v15 }
  0x97   :  { %2531 = vmatpush1.bf16.msra.mxu1 %v3722_v16  ;;  %2501 = vmatprep.subr.bf16.mxu0 %v3724_v17 }
  0x98   :  { %2533 = vmatprep.subr.bf16.mxu1 %v3736_v21 }
  0x9a   :  { %2503 = vmatpush1.bf16.msra.mxu0 %v3756_v33 }
  0x9b   :  { %2535 = vmatpush1.bf16.msra.mxu1 %v3763_v35  ;;  %2505 = vmatprep.subr.bf16.mxu0 %v3765_v37  ;;  %v167_v37 = vsub.s32 2, %v158_v7 }
  0x9c   :  { %2537 = vmatprep.subr.bf16.mxu1 %v3777_v41 }
  0x9e   :  { %2507 = vmatpush1.bf16.msra.mxu0 %v3798_v51 }
  0x9f   :  { %2539 = vmatpush1.bf16.msra.mxu1 %v3804_v53  ;;  %2509 = vmatprep.subr.bf16.mxu0 %v3806_v57 }
  0xa0   :  { %2541 = vmatprep.subr.bf16.mxu1 %v3818_v61 }
  0xa2   :  { %2511 = vmatpush1.bf16.msra.mxu0 %v3839_v9 }
  0xa3   :  { %2543 = vmatpush1.bf16.msra.mxu1 %v3843_v10  ;;  %2545 = vmatprep.subr.bf16.mxu0 %v3845_v11  ;;  %v155_v10 = vld [vmem:[%s4514_s3] sm:$0xff]  ;;  %v163_v11 = vsub.s32 1, %v158_v7 }
  0xa4   :  { %2577 = vmatprep.subr.bf16.mxu1 %v3857_v20  ;;  %v4173_v9 = vrot.slane %v155_v10, %v159_v3  ;;  %v4179_v41 = vrot.slane %v155_v10, %v171_v46 }
  0xa5   :  { %v4175_v20 = vrot.slane %v155_v10, %v163_v11  ;;  %v4182_v11 = vrot.slane %v155_v10, %v167_v37 }
  0xa6   :  { %4627 = vst [vmem:[#allocation39_spill] sm:$0xff] %v4173_v9  ;;  %4629 = vst [vmem:[#allocation41_spill] sm:$0xff] %v4179_v41 }
  0xa7   :  { %4628 = vst [vmem:[#allocation40_spill] sm:$0xff] %v4175_v20  ;;  %4630 = vst [vmem:[#allocation42_spill] sm:$0xff] %v4182_v11 }
 0x138   :  { %v794_v61 = vpop.f32.mrb[0].mxu0 }
 0x139   :  { %v2864_v57 = vadd.f32 %v794_v61, %v4173_v9  ;;  %v865_v0 = vpop.f32.mrb[0].mxu1  ;;  %v796_v53 = vpop.f32.mrb[1].mxu0 }
 0x13a   :  { %v2865_v58 = vadd.f32 %v796_v53, %v4175_v20  ;;  %v867_v40 = vpop.f32.mrb[1].mxu1  ;;  %v2872_v33 = vadd.f32 %v865_v0, %v4182_v11 }
 0x13b   :  { %v2190_v45 = vmul.f32 -1.442695, %v2864_v57  ;;  %v2873_v3 = vadd.f32 %v867_v40, %v4179_v41  ;;  %v175_v57 = vsub.s32 4, %v158_v7 }
 0x13c   :  { %v2191_v51 = vmul.f32 -1.442695, %v2865_v58  ;;  %v179_v58 = vsub.s32 5, %v158_v7 }
 0x13d   :  { %2932 = vpow2.f32 %v2190_v45  ;;  %v2192_v35 = vmul.f32 -1.442695, %v2873_v3  ;;  %v4185_v37 = vrot.slane %v155_v10, %v175_v57 }
 0x13e   :  { %2934 = vpow2.f32 %v2191_v51  ;;  %v4187_v0 = vrot.slane %v155_v10, %v179_v58 }
 0x13f   :  { %2936 = vpow2.f32 %v2192_v35  ;;  %4631 = vst [vmem:[#allocation43_spill] sm:$0xff] %v4185_v37 }
 0x140   :  { %2938 = vtanh.f32 %v2872_v33  ;;  %v187_v33 = vsub.s32 7, %v158_v7 }
 0x147   :  { %v2933_v61 = vpop.eup %2932 }
 0x148   :  { %v2935_v9 = vpop.eup %2934  ;;  %v1023_v21 = vadd.f32 1.0, %v2933_v61 }
 0x149   :  { %v1029_v53 = vadd.f32 1.0, %v2935_v9  ;;  %v2937_v46 = vpop.eup %2936 }
 0x14a   :  { %2940 = vrcp.f32 %v1023_v21  ;;  %v2939_v45 = vpop.eup %2938  ;;  %v1036_v40 = vadd.f32 1.0, %v2937_v46 }
 0x14b   :  { %2942 = vrcp.f32 %v1029_v53 }
 0x14c   :  { %2944 = vrcp.f32 %v1036_v40 }
 0x154   :  { %v2941_v51 = vpop.eup %2940 }
 0x155   :  { %v2943_v20 = vpop.eup %2942  ;;  %v1040_v3 = vmul.f32 %v2941_v51, %v2939_v45  ;;  %v4194_v45 = vrot.slane %v155_v10, %v187_v33 }
 0x156   :  { %v1039_v41 = vmul.f32 0.0, %v2943_v20  ;;  %v183_v20 = vsub.s32 6, %v158_v7  ;;  %v2945_v51 = vpop.eup %2944 }
 0x158   :  { %v940_v11 = vpop.f32.mrb[14].mxu0  ;;  %v4189_v61 = vadd.f32 %v1040_v3, %v1039_v41  ;;  %v4197_v58 = vrot.slane %v155_v10, %v183_v20 }
 0x159   :  { %v2886_v21 = vadd.f32 %v940_v11, %v4185_v37  ;;  %v1011_v35 = vpop.f32.mrb[14].mxu1  ;;  %v942_v9 = vpop.f32.mrb[15].mxu0 }
 0x15a   :  { %2946 = vtanh.f32 %v4189_v61  ;;  %v2887_v53 = vadd.f32 %v942_v9, %v4187_v0  ;;  %v1013_v46 = vpop.f32.mrb[15].mxu1  ;;  %v4199_v11 = vpop.permute.xlu0 %1072  ;;  %v2894_v37 = vadd.f32 %v1011_v35, %v4197_v58 }
 0x15b   :  { %v2193_v57 = vmul.f32 -1.442695, %v2886_v21  ;;  %v2895_v41 = vadd.f32 %v1013_v46, %v4194_v45  ;;  %4632 = vst [vmem:[#allocation44_spill] sm:$0xff] %v4199_v11  ;;  %vm1074_vm4 = vcmp.eq.s32.totalorder %v4199_v11, 1  ;;  %v4633_v46 = vld [vmem:[#allocation31_spill] sm:$0xff] }
 0x15c   :  { %v2194_v17 = vmul.f32 -1.442695, %v2887_v53 }
 0x15d   :  { %2948 = vpow2.f32 %v2193_v57  ;;  %v2195_v3 = vmul.f32 -1.442695, %v2895_v41  ;;  %v4634_v57 = vld [vmem:[#allocation32_spill] sm:$0xff] }
 0x15e   :  { %2950 = vpow2.f32 %v2194_v17 }
 0x15f   :  { %2952 = vpow2.f32 %v2195_v3  ;;  %v4636_v3 = vld [vmem:[#allocation34_spill] sm:$0xff] }
 0x160   :  { %2954 = vtanh.f32 %v2894_v37 }
 0x164   :  { %v2947_v40 = vpop.eup %2946 }
 0x165   :  { %v1043_v9 = vmul.f32 %v2947_v40, %v2945_v51  ;;  %v4635_v40 = vld [vmem:[#allocation33_spill] sm:$0xff] }
 0x167   :  { %v2949_v21 = vpop.eup %2948  ;;  %2197 = vmatmul.mubr.msk.f32.vlgmr.msra.gmra.mrb[2].mxu0 %vm1074_vm4, %v1043_v9  ;;  %2198 = vmatmul.mubr.msk.f32.vlgmr.msra.gmra.mrb[2].mxu1 %vm1074_vm4, %v1043_v9  ;;  %v4209_v17 = vsel %vm1074_vm4, %v1043_v9, 0.0 }
 0x168   :  { %v2951_v10 = vpop.eup %2950  ;;  %v1047_v7 = vadd.f32 1.0, %v2949_v21  ;;  %2547 = vmatpush1.bf16.msra.mxu0 %v3875_v29  ;;  %2579 = vmatpush1.bf16.msra.mxu1 %v3879_v34  ;;  %1087 = vst [vmem:[%s4515_s6] sm:$0xff] %v4209_v17 }
 0x169   :  { %v1053_v33 = vadd.f32 1.0, %v2951_v10  ;;  %2549 = vmatprep.subr.bf16.mxu0 %v3881_v38  ;;  %2581 = vmatprep.subr.bf16.mxu1 %v3893_v50  ;;  %v2953_v37 = vpop.eup %2952  ;;  %v4637_v10 = vld [vmem:[#allocation35_spill] sm:$0xff] }
 0x16a   :  { %2956 = vrcp.f32 %v1047_v7  ;;  %1316 = vmatprep.mubr.f32.mxu0 %v4625_v39  ;;  %1387 = vmatprep.mubr.f32.mxu1 %v4625_v39  ;;  %v2955_v35 = vpop.eup %2954  ;;  %v1060_v41 = vadd.f32 1.0, %v2953_v37  ;;  %v4638_v7 = vld [vmem:[#allocation36_spill] sm:$0xff] }
 0x16b   :  { %2958 = vrcp.f32 %v1053_v33  ;;  %v4639_v33 = vld [vmem:[#allocation37_spill] sm:$0xff] }
 0x16c   :  { %2551 = vmatpush1.bf16.msra.mxu0 %v3913_v60  ;;  %2583 = vmatpush1.bf16.msra.mxu1 %v3917_v62  ;;  %2960 = vrcp.f32 %v1060_v41 }
 0x16d   :  { %2553 = vmatprep.subr.bf16.mxu0 %v3919_v63  ;;  %2585 = vmatprep.subr.bf16.mxu1 %v3931_v14 }
 0x170   :  { %2555 = vmatpush1.bf16.msra.mxu0 %v3951_v24  ;;  %2587 = vmatpush1.bf16.msra.mxu1 %v3955_v25 }
 0x171   :  { %2557 = vmatprep.subr.bf16.mxu0 %v3957_v27  ;;  %2589 = vmatprep.subr.bf16.mxu1 %v3969_v48 }
 0x174   :  { %v2957_v53 = vpop.eup %2956  ;;  %2559 = vmatpush1.bf16.msra.mxu0 %v4633_v46  ;;  %2591 = vmatpush1.bf16.msra.mxu1 %v4634_v57  ;;  %v4640_v46 = vld [vmem:[#allocation38_spill] sm:$0xff] }
 0x175   :  { %v2959_v20 = vpop.eup %2958  ;;  %v1064_v51 = vmul.f32 %v2957_v53, %v2955_v35  ;;  %2561 = vmatprep.subr.bf16.mxu0 %v4635_v40  ;;  %2593 = vmatprep.subr.bf16.mxu1 %v4636_v3  ;;  %v4248_v35 = vpop.permute.xlu0 %1079 }
 0x176   :  { %v1063_v9 = vmul.f32 0.0, %v2959_v20  ;;  %v2961_v37 = vpop.eup %2960  ;;  %vm1081_vm5 = vcmp.eq.s32.totalorder %v4248_v35, 1 }
 0x178   :  { %v4233_v21 = vadd.f32 %v1064_v51, %v1063_v9  ;;  %2563 = vmatpush1.bf16.msra.mxu0 %v4637_v10  ;;  %2595 = vmatpush1.bf16.msra.mxu1 %v4638_v7  ;;  %v4641_v51 = vld [vmem:[#allocation17_spill] sm:$0xff]  ;;  %v4642_v9 = vld [vmem:[#allocation18_spill] sm:$0xff] }
 0x179   :  { %2565 = vmatprep.subr.bf16.mxu0 %v4639_v33  ;;  %2597 = vmatprep.subr.bf16.mxu1 %v4640_v46 }
 0x17a   :  { %2962 = vtanh.f32 %v4233_v21 }
 0x17c   :  { %2567 = vmatpush1.bf16.msra.mxu0 %v4059_v52  ;;  %2599 = vmatpush1.bf16.msra.mxu1 %v4063_v23 }
 0x17d   :  { %2569 = vmatprep.subr.bf16.mxu0 %v4065_v12  ;;  %2601 = vmatprep.subr.bf16.mxu1 %v4077_v26 }
 0x180   :  { %2571 = vmatpush1.bf16.msra.mxu0 %v4095_v49  ;;  %2603 = vmatpush1.bf16.msra.mxu1 %v4099_v19 }
 0x181   :  { %2573 = vmatprep.subr.bf16.mxu0 %v4101_v1  ;;  %2605 = vmatprep.subr.bf16.mxu1 %v4110_v6 }
 0x184   :  { %v2963_v53 = vpop.eup %2962  ;;  %2575 = vmatpush1.bf16.msra.mxu0 %v4119_v13  ;;  %2607 = vmatpush1.bf16.msra.mxu1 %v4123_v28 }
 0x185   :  { %v1067_v20 = vmul.f32 %v2963_v53, %v2961_v37  ;;  %2609 = vmatprep.subr.bf16.mxu0 %v3533_v18  ;;  %2641 = vmatprep.subr.bf16.mxu1 %v3544_v22  ;;  %v4643_v37 = vld [vmem:[#allocation19_spill] sm:$0xff]  ;;  %v4644_v53 = vld [vmem:[#allocation20_spill] sm:$0xff] }
 0x187   :  { %2199 = vmatmul.mubr.msk.f32.vlgmr.msra.gmra.mrb[12].mxu0 %vm1081_vm5, %v1067_v20  ;;  %2200 = vmatmul.mubr.msk.f32.vlgmr.msra.gmra.mrb[12].mxu1 %vm1081_vm5, %v1067_v20  ;;  %v4261_v41 = vsel %vm1081_vm5, %v1067_v20, 0.0  ;;  %v4645_v20 = vld [vmem:[#allocation21_spill] sm:$0xff] }
 0x188   :  { %2611 = vmatpush1.bf16.msra.mxu0 %v3561_v30  ;;  %2643 = vmatpush1.bf16.msra.mxu1 %v3564_v31  ;;  %2196 = vst [vmem:[%s4515_s6 + $0x38] sm:$0xff] %v4261_v41 }
 0x189   :  { %2613 = vmatprep.subr.bf16.mxu0 %v3566_v32  ;;  %2645 = vmatprep.subr.bf16.mxu1 %v3578_v36 }
 0x18a   :  { %1544 = vmatprep.mubr.f32.mxu0 %v4625_v39  ;;  %1615 = vmatprep.mubr.f32.mxu1 %v4625_v39 }
 0x18c   :  { %2615 = vmatpush1.bf16.msra.mxu0 %v3598_v42  ;;  %2647 = vmatpush1.bf16.msra.mxu1 %v3602_v43 }
 0x18d   :  { %2617 = vmatprep.subr.bf16.mxu0 %v3604_v44  ;;  %2649 = vmatprep.subr.bf16.mxu1 %v3616_v47 }
 0x190   :  { %2619 = vmatpush1.bf16.msra.mxu0 %v3637_v54  ;;  %2651 = vmatpush1.bf16.msra.mxu1 %v3642_v55  ;;  %v4656_v55 = vld [vmem:[#allocation40_spill] sm:$0xff] }
 0x191   :  { %2621 = vmatprep.subr.bf16.mxu0 %v3644_v56  ;;  %2653 = vmatprep.subr.bf16.mxu1 %v3656_v59  ;;  %v4655_v59 = vld [vmem:[#allocation39_spill] sm:$0xff] }
 0x194   :  { %2623 = vmatpush1.bf16.msra.mxu0 %v3677_v2  ;;  %2655 = vmatpush1.bf16.msra.mxu1 %v3682_v4  ;;  %v4646_v2 = vld [vmem:[#allocation22_spill] sm:$0xff]  ;;  %v4647_v4 = vld [vmem:[#allocation23_spill] sm:$0xff] }
 0x195   :  { %2625 = vmatprep.subr.bf16.mxu0 %v3684_v5  ;;  %2657 = vmatprep.subr.bf16.mxu1 %v3696_v8  ;;  %v4648_v5 = vld [vmem:[#allocation24_spill] sm:$0xff]  ;;  %v4649_v8 = vld [vmem:[#allocation25_spill] sm:$0xff] }
 0x198   :  { %2627 = vmatpush1.bf16.msra.mxu0 %v3717_v15  ;;  %2659 = vmatpush1.bf16.msra.mxu1 %v3722_v16  ;;  %v4650_v15 = vld [vmem:[#allocation26_spill] sm:$0xff]  ;;  %v4651_v16 = vld [vmem:[#allocation27_spill] sm:$0xff] }
 0x199   :  { %2629 = vmatprep.subr.bf16.mxu0 %v4641_v51  ;;  %2661 = vmatprep.subr.bf16.mxu1 %v4642_v9  ;;  %v4652_v51 = vld [vmem:[#allocation28_spill] sm:$0xff]  ;;  %v4653_v9 = vld [vmem:[#allocation29_spill] sm:$0xff] }
 0x19c   :  { %2631 = vmatpush1.bf16.msra.mxu0 %v4643_v37  ;;  %2663 = vmatpush1.bf16.msra.mxu1 %v4644_v53  ;;  %v4654_v37 = vld [vmem:[#allocation30_spill] sm:$0xff] }
 0x19d   :  { %2633 = vmatprep.subr.bf16.mxu0 %v4645_v20  ;;  %2665 = vmatprep.subr.bf16.mxu1 %v4646_v2 }
 0x1a0   :  { %2635 = vmatpush1.bf16.msra.mxu0 %v4647_v4  ;;  %2667 = vmatpush1.bf16.msra.mxu1 %v4648_v5 }
 0x1a1   :  { %2637 = vmatprep.subr.bf16.mxu0 %v4649_v8  ;;  %2669 = vmatprep.subr.bf16.mxu1 %v4650_v15  ;;  %v4657_v15 = vld [vmem:[#allocation41_spill] sm:$0xff] }
 0x1a4   :  { %2639 = vmatpush1.bf16.msra.mxu0 %v4651_v16  ;;  %2671 = vmatpush1.bf16.msra.mxu1 %v4652_v51  ;;  %v4658_v51 = vld [vmem:[#allocation42_spill] sm:$0xff] }
 0x1a5   :  { %2673 = vmatprep.subr.bf16.mxu0 %v4653_v9  ;;  %2705 = vmatprep.subr.bf16.mxu1 %v4654_v37 }
 0x23a   :  { %v1172_v53 = vpop.f32.mrb[2].mxu0  ;;  %v1243_v20 = vpop.f32.mrb[2].mxu1 }
 0x23b   :  { %v2866_v2 = vadd.f32 %v1172_v53, %v4655_v59  ;;  %v1174_v56 = vpop.f32.mrb[3].mxu0  ;;  %v1245_v4 = vpop.f32.mrb[3].mxu1  ;;  %v2874_v44 = vadd.f32 %v1243_v20, %v4658_v51 }
 0x23c   :  { %v2867_v5 = vadd.f32 %v1174_v56, %v4656_v55  ;;  %v2875_v16 = vadd.f32 %v1245_v4, %v4657_v15  ;;  %v1076_v4 = vsel %vm1074_vm4, %v4189_v61, 0.0 }
 0x23d   :  { %v2201_v54 = vmul.f32 -1.442695, %v2866_v2  ;;  %v4305_v2 = vpop.permute.xlu1 %1450 }
 0x23e   :  { %v2202_v8 = vmul.f32 -1.442695, %v2867_v5  ;;  %v2203_v47 = vmul.f32 -1.442695, %v2875_v16  ;;  %vm1452_vm6 = vcmp.eq.s32.totalorder %v4305_v2, 1 }
 0x23f   :  { %2964 = vpow2.f32 %v2201_v54 }
 0x240   :  { %2966 = vpow2.f32 %v2202_v8 }
 0x241   :  { %2968 = vpow2.f32 %v2203_v47 }
 0x242   :  { %2970 = vtanh.f32 %v2874_v44 }
 0x249   :  { %v2965_v9 = vpop.eup %2964 }
 0x24a   :  { %v2967_v43 = vpop.eup %2966  ;;  %v1401_v37 = vadd.f32 1.0, %v2965_v9 }
 0x24b   :  { %v1407_v42 = vadd.f32 1.0, %v2967_v43  ;;  %v2969_v53 = vpop.eup %2968 }
 0x24c   :  { %2972 = vrcp.f32 %v1401_v37  ;;  %v2971_v59 = vpop.eup %2970  ;;  %v1414_v8 = vadd.f32 1.0, %v2969_v53 }
 0x24d   :  { %2974 = vrcp.f32 %v1407_v42  ;;  %v4659_v42 = vld [vmem:[#allocation43_spill] sm:$0xff] }
 0x24e   :  { %2976 = vrcp.f32 %v1414_v8 }
 0x256   :  { %v2973_v56 = vpop.eup %2972 }
 0x257   :  { %v2975_v54 = vpop.eup %2974  ;;  %v1418_v5 = vmul.f32 %v2973_v56, %v2971_v59 }
 0x258   :  { %v1417_v16 = vmul.f32 %v2975_v54, %v1076_v4  ;;  %v2977_v54 = vpop.eup %2976 }
 0x25a   :  { %v1419_v47 = vadd.f32 %v1418_v5, %v1417_v16  ;;  %v1318_v44 = vpop.f32.mrb[12].mxu0  ;;  %v1389_v43 = vpop.f32.mrb[12].mxu1 }
 0x25b   :  { %v2884_v9 = vadd.f32 %v1318_v44, %v4659_v42  ;;  %v1320_v37 = vpop.f32.mrb[13].mxu0  ;;  %v1391_v20 = vpop.f32.mrb[13].mxu1  ;;  %v2892_v16 = vadd.f32 %v1389_v43, %v4197_v58 }
 0x25c   :  { %2978 = vtanh.f32 %v1419_v47  ;;  %v4314_v51 = vsel %vm1452_vm6, %v1419_v47, %v1076_v4  ;;  %v2885_v61 = vadd.f32 %v1320_v37, %v4187_v0  ;;  %v2893_v56 = vadd.f32 %v1391_v20, %v4194_v45 }
 0x25d   :  { %v2204_v59 = vmul.f32 -1.442695, %v2884_v9 }
 0x25e   :  { %v2205_v53 = vmul.f32 -1.442695, %v2885_v61  ;;  %v2206_v8 = vmul.f32 -1.442695, %v2893_v56 }
 0x25f   :  { %2980 = vpow2.f32 %v2204_v59  ;;  %v1083_v59 = vsel %vm1081_vm5, %v4233_v21, 0.0 }
 0x260   :  { %2982 = vpow2.f32 %v2205_v53 }
 0x261   :  { %2984 = vpow2.f32 %v2206_v8 }
 0x262   :  { %2986 = vtanh.f32 %v2892_v16 }
 0x266   :  { %v2979_v5 = vpop.eup %2978 }
 0x267   :  { %v1421_v44 = vmul.f32 %v2979_v5, %v2977_v54  ;;  %v4660_v54 = vld [vmem:[#allocation31_spill] sm:$0xff]  ;;  %v4350_v5 = vpop.permute.xlu1 %1457 }
 0x268   :  { %vm1459_vm7 = vcmp.eq.s32.totalorder %v4350_v5, 1 }
 0x269   :  { %v2981_v11 = vpop.eup %2980  ;;  %v4322_v4 = vsel %vm1452_vm6, %v1421_v44, %v4209_v17  ;;  %v1462_v47 = vsel %vm1452_vm6, %v1421_v44, 0.0 }
 0x26a   :  { %v2983_v9 = vpop.eup %2982  ;;  %v1425_v37 = vadd.f32 1.0, %v2981_v11  ;;  %2207 = vst [vmem:[%s4515_s6 + $0x10] sm:$0xff] %v1462_v47  ;;  %1545 = vmatmul.mubr.f32.vlgmr.msra.gmra.mrb[4].mxu0 %v4322_v4  ;;  %1616 = vmatmul.mubr.f32.vlgmr.msra.gmra.mrb[4].mxu1 %v4322_v4 }
 0x26b   :  { %v1431_v43 = vadd.f32 1.0, %v2983_v9  ;;  %2675 = vmatpush1.bf16.msra.mxu0 %v3875_v29  ;;  %2707 = vmatpush1.bf16.msra.mxu1 %v3879_v34  ;;  %v2985_v11 = vpop.eup %2984 }
 0x26c   :  { %2988 = vrcp.f32 %v1425_v37  ;;  %2677 = vmatprep.subr.bf16.mxu0 %v3881_v38  ;;  %2709 = vmatprep.subr.bf16.mxu1 %v3893_v50  ;;  %v2987_v17 = vpop.eup %2986  ;;  %v1438_v56 = vadd.f32 1.0, %v2985_v11  ;;  %v4664_v11 = vld [vmem:[#allocation6_spill] sm:$0xff] }
 0x26d   :  { %2990 = vrcp.f32 %v1431_v43  ;;  %1690 = vmatprep.mubr.f32.mxu0 %v4625_v39  ;;  %1761 = vmatprep.mubr.f32.mxu1 %v4625_v39 }
 0x26e   :  { %2992 = vrcp.f32 %v1438_v56  ;;  %v4674_v56 = vld [vmem:[#allocation16_spill] sm:$0xff] }
 0x26f   :  { %2679 = vmatpush1.bf16.msra.mxu0 %v3913_v60  ;;  %2711 = vmatpush1.bf16.msra.mxu1 %v3917_v62 }
 0x270   :  { %2681 = vmatprep.subr.bf16.mxu0 %v3919_v63  ;;  %2713 = vmatprep.subr.bf16.mxu1 %v3931_v14 }
 0x273   :  { %2683 = vmatpush1.bf16.msra.mxu0 %v3951_v24  ;;  %2715 = vmatpush1.bf16.msra.mxu1 %v3955_v25 }
 0x274   :  { %2685 = vmatprep.subr.bf16.mxu0 %v3957_v27  ;;  %2717 = vmatprep.subr.bf16.mxu1 %v3969_v48 }
 0x276   :  { %v2989_v20 = vpop.eup %2988 }
 0x277   :  { %v2991_v61 = vpop.eup %2990  ;;  %v1442_v53 = vmul.f32 %v2989_v20, %v2987_v17  ;;  %2687 = vmatpush1.bf16.msra.mxu0 %v4660_v54  ;;  %2719 = vmatpush1.bf16.msra.mxu1 %v4634_v57  ;;  %v4665_v17 = vld [vmem:[#allocation7_spill] sm:$0xff]  ;;  %v4670_v20 = vld [vmem:[#allocation12_spill] sm:$0xff] }
 0x278   :  { %v1441_v8 = vmul.f32 %v2991_v61, %v1083_v59  ;;  %2689 = vmatprep.subr.bf16.mxu0 %v4635_v40  ;;  %2721 = vmatprep.subr.bf16.mxu1 %v4636_v3  ;;  %v2993_v44 = vpop.eup %2992  ;;  %v4671_v61 = vld [vmem:[#allocation13_spill] sm:$0xff] }
 0x27a   :  { %v1443_v16 = vadd.f32 %v1442_v53, %v1441_v8  ;;  %v4673_v53 = vld [vmem:[#allocation15_spill] sm:$0xff]  ;;  %v4675_v8 = vld [vmem:[#allocation17_spill] sm:$0xff] }
 0x27b   :  { %2691 = vmatpush1.bf16.msra.mxu0 %v4637_v10  ;;  %2723 = vmatpush1.bf16.msra.mxu1 %v4638_v7 }
 0x27c   :  { %2994 = vtanh.f32 %v1443_v16  ;;  %v4359_v21 = vsel %vm1459_vm7, %v1443_v16, %v1083_v59  ;;  %2693 = vmatprep.subr.bf16.mxu0 %v4639_v33  ;;  %2725 = vmatprep.subr.bf16.mxu1 %v4640_v46  ;;  %v4672_v59 = vld [vmem:[#allocation14_spill] sm:$0xff] }
 0x27d   :  { %v4676_v16 = vld [vmem:[#allocation18_spill] sm:$0xff] }
 0x27f   :  { %2695 = vmatpush1.bf16.msra.mxu0 %v4059_v52  ;;  %2727 = vmatpush1.bf16.msra.mxu1 %v4063_v23 }
 0x280   :  { %2697 = vmatprep.subr.bf16.mxu0 %v4065_v12  ;;  %2729 = vmatprep.subr.bf16.mxu1 %v4077_v26 }
 0x283   :  { %2699 = vmatpush1.bf16.msra.mxu0 %v4095_v49  ;;  %2731 = vmatpush1.bf16.msra.mxu1 %v4099_v19 }
 0x284   :  { %2701 = vmatprep.subr.bf16.mxu0 %v4101_v1  ;;  %2733 = vmatprep.subr.bf16.mxu1 %v4110_v6 }
 0x286   :  { %v2995_v47 = vpop.eup %2994 }
 0x287   :  { %2703 = vmatpush1.bf16.msra.mxu0 %v4119_v13  ;;  %2735 = vmatpush1.bf16.msra.mxu1 %v4123_v28  ;;  %v1445_v9 = vmul.f32 %v2995_v47, %v2993_v44  ;;  %v4677_v44 = vld [vmem:[#allocation19_spill] sm:$0xff]  ;;  %v4678_v47 = vld [vmem:[#allocation20_spill] sm:$0xff] }
 0x288   :  { %2737 = vmatprep.subr.bf16.mxu0 %v3533_v18  ;;  %2769 = vmatprep.subr.bf16.mxu1 %v3544_v22  ;;  %v4661_v18 = vld [vmem:[#allocation3_spill] sm:$0xff]  ;;  %v4662_v22 = vld [vmem:[#allocation4_spill] sm:$0xff] }
 0x289   :  { %v4378_v37 = vsel %vm1459_vm7, %v1445_v9, %v4261_v41  ;;  %v1467_v43 = vsel %vm1459_vm7, %v1445_v9, 0.0  ;;  %v4663_v41 = vld [vmem:[#allocation5_spill] sm:$0xff] }
 0x28a   :  { %2208 = vst [vmem:[%s4515_s6 + $0x28] sm:$0xff] %v1467_v43  ;;  %1691 = vmatmul.mubr.f32.vlgmr.msra.gmra.mrb[10].mxu0 %v4378_v37  ;;  %1762 = vmatmul.mubr.f32.vlgmr.msra.gmra.mrb[10].mxu1 %v4378_v37  ;;  %v4679_v9 = vld [vmem:[#allocation21_spill] sm:$0xff]  ;;  %v4680_v43 = vld [vmem:[#allocation22_spill] sm:$0xff] }
 0x28b   :  { %2739 = vmatpush1.bf16.msra.mxu0 %v3561_v30  ;;  %2771 = vmatpush1.bf16.msra.mxu1 %v3564_v31  ;;  %v4666_v30 = vld [vmem:[#allocation8_spill] sm:$0xff]  ;;  %v4667_v31 = vld [vmem:[#allocation9_spill] sm:$0xff] }
 0x28c   :  { %2741 = vmatprep.subr.bf16.mxu0 %v3566_v32  ;;  %2773 = vmatprep.subr.bf16.mxu1 %v3578_v36  ;;  %v4668_v32 = vld [vmem:[#allocation10_spill] sm:$0xff]  ;;  %v4669_v36 = vld [vmem:[#allocation11_spill] sm:$0xff] }
 0x28d   :  { %1900 = vmatprep.mubr.f32.mxu0 %v4625_v39  ;;  %1971 = vmatprep.mubr.f32.mxu1 %v4625_v39 }
 0x28f   :  { %2743 = vmatpush1.bf16.msra.mxu0 %v4661_v18  ;;  %2775 = vmatpush1.bf16.msra.mxu1 %v4662_v22  ;;  %v4681_v18 = vld [vmem:[#allocation23_spill] sm:$0xff]  ;;  %v4682_v22 = vld [vmem:[#allocation24_spill] sm:$0xff] }
 0x290   :  { %2745 = vmatprep.subr.bf16.mxu0 %v4663_v41  ;;  %2777 = vmatprep.subr.bf16.mxu1 %v4664_v11  ;;  %v4683_v41 = vld [vmem:[#allocation25_spill] sm:$0xff]  ;;  %v4684_v11 = vld [vmem:[#allocation26_spill] sm:$0xff] }
 0x293   :  { %2747 = vmatpush1.bf16.msra.mxu0 %v4665_v17  ;;  %2779 = vmatpush1.bf16.msra.mxu1 %v4666_v30  ;;  %v4685_v17 = vld [vmem:[#allocation27_spill] sm:$0xff]  ;;  %v4686_v30 = vld [vmem:[#allocation28_spill] sm:$0xff] }
 0x294   :  { %2749 = vmatprep.subr.bf16.mxu0 %v4667_v31  ;;  %2781 = vmatprep.subr.bf16.mxu1 %v4668_v32  ;;  %v4687_v31 = vld [vmem:[#allocation29_spill] sm:$0xff]  ;;  %v4688_v32 = vld [vmem:[#allocation30_spill] sm:$0xff] }
 0x297   :  { %2751 = vmatpush1.bf16.msra.mxu0 %v4669_v36  ;;  %2783 = vmatpush1.bf16.msra.mxu1 %v4670_v20 }
 0x298   :  { %2753 = vmatprep.subr.bf16.mxu0 %v4671_v61  ;;  %2785 = vmatprep.subr.bf16.mxu1 %v4672_v59  ;;  %v4689_v61 = vld [vmem:[#allocation39_spill] sm:$0xff] }
 0x29b   :  { %2755 = vmatpush1.bf16.msra.mxu0 %v4673_v53  ;;  %2787 = vmatpush1.bf16.msra.mxu1 %v4674_v56 }
 0x29c   :  { %2757 = vmatprep.subr.bf16.mxu0 %v4675_v8  ;;  %2789 = vmatprep.subr.bf16.mxu1 %v4676_v16 }
 0x29f   :  { %2759 = vmatpush1.bf16.msra.mxu0 %v4677_v44  ;;  %2791 = vmatpush1.bf16.msra.mxu1 %v4678_v47 }
 0x2a0   :  { %2761 = vmatprep.subr.bf16.mxu0 %v4679_v9  ;;  %2793 = vmatprep.subr.bf16.mxu1 %v4680_v43  ;;  %v4690_v43 = vld [vmem:[#allocation42_spill] sm:$0xff] }
 0x2a3   :  { %2763 = vmatpush1.bf16.msra.mxu0 %v4681_v18  ;;  %2795 = vmatpush1.bf16.msra.mxu1 %v4682_v22 }
 0x2a4   :  { %2765 = vmatprep.subr.bf16.mxu0 %v4683_v41  ;;  %2797 = vmatprep.subr.bf16.mxu1 %v4684_v11 }
 0x2a7   :  { %2767 = vmatpush1.bf16.msra.mxu0 %v4685_v17  ;;  %2799 = vmatpush1.bf16.msra.mxu1 %v4686_v30 }
 0x2a8   :  { %2801 = vmatprep.subr.bf16.mxu0 %v4687_v31  ;;  %2833 = vmatprep.subr.bf16.mxu1 %v4688_v32 }
 0x33d   :  { %v1546_v36 = vpop.f32.mrb[4].mxu0  ;;  %v1617_v20 = vpop.f32.mrb[4].mxu1 }
 0x33e   :  { %v2868_v59 = vadd.f32 %v1546_v36, %v4689_v61  ;;  %v1548_v53 = vpop.f32.mrb[5].mxu0  ;;  %v1619_v56 = vpop.f32.mrb[5].mxu1  ;;  %v2876_v18 = vadd.f32 %v1617_v20, %v4690_v43 }
 0x33f   :  { %v2869_v8 = vadd.f32 %v1548_v53, %v4656_v55  ;;  %v2877_v47 = vadd.f32 %v1619_v56, %v4657_v15 }
 0x340   :  { %v2209_v16 = vmul.f32 -1.442695, %v2868_v59 }
 0x341   :  { %v2210_v44 = vmul.f32 -1.442695, %v2869_v8  ;;  %v2211_v9 = vmul.f32 -1.442695, %v2877_v47 }
 0x342   :  { %2996 = vpow2.f32 %v2209_v16 }
 0x343   :  { %2998 = vpow2.f32 %v2210_v44 }
 0x344   :  { %3000 = vpow2.f32 %v2211_v9 }
 0x345   :  { %3002 = vtanh.f32 %v2876_v18 }
 0x34c   :  { %v2997_v22 = vpop.eup %2996 }
 0x34d   :  { %v2999_v41 = vpop.eup %2998  ;;  %v1775_v11 = vadd.f32 1.0, %v2997_v22 }
 0x34e   :  { %v1781_v17 = vadd.f32 1.0, %v2999_v41  ;;  %v3001_v30 = vpop.eup %3000 }
 0x34f   :  { %3004 = vrcp.f32 %v1775_v11  ;;  %v3003_v31 = vpop.eup %3002  ;;  %v1788_v53 = vadd.f32 1.0, %v3001_v30 }
 0x350   :  { %3006 = vrcp.f32 %v1781_v17 }
 0x351   :  { %3008 = vrcp.f32 %v1788_v53 }
 0x359   :  { %v3005_v32 = vpop.eup %3004 }
 0x35a   :  { %v3007_v36 = vpop.eup %3006  ;;  %v1792_v59 = vmul.f32 %v3005_v32, %v3003_v31 }
 0x35b   :  { %v1791_v8 = vmul.f32 %v3007_v36, %v4314_v51  ;;  %v3009_v30 = vpop.eup %3008 }
 0x35d   :  { %v1793_v56 = vadd.f32 %v1792_v59, %v1791_v8  ;;  %v1692_v16 = vpop.f32.mrb[10].mxu0  ;;  %v1763_v44 = vpop.f32.mrb[10].mxu1 }
 0x35e   :  { %v2882_v20 = vadd.f32 %v1692_v16, %v4659_v42  ;;  %v1694_v47 = vpop.f32.mrb[11].mxu0  ;;  %v1765_v9 = vpop.f32.mrb[11].mxu1  ;;  %v2890_v36 = vadd.f32 %v1763_v44, %v4197_v58 }
 0x35f   :  { %v2883_v18 = vadd.f32 %v1694_v47, %v4187_v0  ;;  %3010 = vtanh.f32 %v1793_v56  ;;  %v4431_v22 = vsel %vm1459_vm7, %v1793_v56, %v4314_v51  ;;  %v2891_v17 = vadd.f32 %v1765_v9, %v4194_v45 }
 0x360   :  { %v2212_v41 = vmul.f32 -1.442695, %v2882_v20 }
 0x361   :  { %v2213_v11 = vmul.f32 -1.442695, %v2883_v18  ;;  %v2214_v32 = vmul.f32 -1.442695, %v2891_v17 }
 0x362   :  { %3012 = vpow2.f32 %v2212_v41 }
 0x363   :  { %3014 = vpow2.f32 %v2213_v11 }
 0x364   :  { %3016 = vpow2.f32 %v2214_v32 }
 0x365   :  { %3018 = vtanh.f32 %v2890_v36 }
 0x369   :  { %v3011_v31 = vpop.eup %3010 }
 0x36a   :  { %v1795_v59 = vmul.f32 %v3011_v31, %v3009_v30 }
 0x36c   :  { %v3013_v53 = vpop.eup %3012  ;;  %v1820_v8 = vsel %vm1459_vm7, %v1795_v59, %v4322_v4  ;;  %v1824_v51 = vsel %vm1459_vm7, %v1795_v59, 0.0 }
 0x36d   :  { %v3015_v56 = vpop.eup %3014  ;;  %v1799_v16 = vadd.f32 1.0, %v3013_v53  ;;  %2215 = vst [vmem:[%s4515_s6 + $0x20] sm:$0xff] %v1824_v51  ;;  %1901 = vmatmul.mubr.f32.vlgmr.msra.gmra.mrb[6].mxu0 %v1820_v8  ;;  %1972 = vmatmul.mubr.f32.vlgmr.msra.gmra.mrb[6].mxu1 %v1820_v8 }
 0x36e   :  { %v1805_v44 = vadd.f32 1.0, %v3015_v56  ;;  %2803 = vmatpush1.bf16.msra.mxu0 %v3875_v29  ;;  %2835 = vmatpush1.bf16.msra.mxu1 %v3879_v34  ;;  %v3017_v29 = vpop.eup %3016 }
 0x36f   :  { %3020 = vrcp.f32 %v1799_v16  ;;  %2805 = vmatprep.subr.bf16.mxu0 %v3881_v38  ;;  %2837 = vmatprep.subr.bf16.mxu1 %v3893_v50  ;;  %v3019_v34 = vpop.eup %3018 }
 0x370   :  { %3022 = vrcp.f32 %v1805_v44  ;;  %2046 = vmatprep.mubr.f32.mxu0 %v4625_v39  ;;  %2117 = vmatprep.mubr.f32.mxu1 %v4625_v39 }
 0x372   :  { %2807 = vmatpush1.bf16.msra.mxu0 %v3913_v60  ;;  %2839 = vmatpush1.bf16.msra.mxu1 %v3917_v62  ;;  %v1812_v60 = vadd.f32 1.0, %v3017_v29 }
 0x373   :  { %2809 = vmatprep.subr.bf16.mxu0 %v3919_v63  ;;  %2841 = vmatprep.subr.bf16.mxu1 %v3931_v14 }
 0x374   :  { %3024 = vrcp.f32 %v1812_v60 }
 0x376   :  { %2811 = vmatpush1.bf16.msra.mxu0 %v3951_v24  ;;  %2843 = vmatpush1.bf16.msra.mxu1 %v3955_v25 }
 0x377   :  { %2813 = vmatprep.subr.bf16.mxu0 %v3957_v27  ;;  %2845 = vmatprep.subr.bf16.mxu1 %v3969_v48 }
 0x379   :  { %v3021_v38 = vpop.eup %3020 }
 0x37a   :  { %v3023_v50 = vpop.eup %3022  ;;  %v1816_v39 = vmul.f32 %v3021_v38, %v3019_v34  ;;  %2815 = vmatpush1.bf16.msra.mxu0 %v4660_v54  ;;  %2847 = vmatpush1.bf16.msra.mxu1 %v4634_v57 }
 0x37b   :  { %v1815_v62 = vmul.f32 %v3023_v50, %v4359_v21  ;;  %2817 = vmatprep.subr.bf16.mxu0 %v4635_v40  ;;  %2849 = vmatprep.subr.bf16.mxu1 %v4636_v3 }
 0x37d   :  { %v1817_v63 = vadd.f32 %v1816_v39, %v1815_v62 }
 0x37e   :  { %2819 = vmatpush1.bf16.msra.mxu0 %v4637_v10  ;;  %2851 = vmatpush1.bf16.msra.mxu1 %v4638_v7  ;;  %v3025_v24 = vpop.eup %3024 }
 0x37f   :  { %2821 = vmatprep.subr.bf16.mxu0 %v4639_v33  ;;  %2853 = vmatprep.subr.bf16.mxu1 %v4640_v46  ;;  %3026 = vtanh.f32 %v1817_v63  ;;  %v4469_v14 = vsel %vm1452_vm6, %v1817_v63, %v4359_v21 }
 0x382   :  { %2823 = vmatpush1.bf16.msra.mxu0 %v4059_v52  ;;  %2855 = vmatpush1.bf16.msra.mxu1 %v4063_v23 }
 0x383   :  { %2825 = vmatprep.subr.bf16.mxu0 %v4065_v12  ;;  %2857 = vmatprep.subr.bf16.mxu1 %v4077_v26 }
 0x386   :  { %2827 = vmatpush1.bf16.msra.mxu0 %v4095_v49  ;;  %2859 = vmatpush1.bf16.msra.mxu1 %v4099_v19 }
 0x387   :  { %2829 = vmatprep.subr.bf16.mxu0 %v4101_v1  ;;  %2861 = vmatprep.subr.bf16.mxu1 %v4110_v6 }
 0x389   :  { %v3027_v25 = vpop.eup %3026 }
 0x38a   :  { %2831 = vmatpush1.bf16.msra.mxu0 %v4119_v13  ;;  %2863 = vmatpush1.bf16.msra.mxu1 %v4123_v28  ;;  %v1819_v27 = vmul.f32 %v3027_v25, %v3025_v24 }
 0x38c   :  { %v1822_v48 = vsel %vm1452_vm6, %v1819_v27, %v4378_v37  ;;  %v1826_v12 = vsel %vm1452_vm6, %v1819_v27, 0.0 }
 0x38d   :  { %2216 = vst [vmem:[%s4515_s6 + $0x18] sm:$0xff] %v1826_v12  ;;  %2047 = vmatmul.mubr.f32.vlgmr.msra.gmra.mrb[8].mxu0 %v1822_v48  ;;  %2118 = vmatmul.mubr.f32.vlgmr.msra.gmra.mrb[8].mxu1 %v1822_v48 }
 0x440   :  { %v1902_v23 = vpop.f32.mrb[6].mxu0  ;;  %v1973_v1 = vpop.f32.mrb[6].mxu1 }
 0x441   :  { %v2870_v19 = vadd.f32 %v1902_v23, %v4689_v61  ;;  %v1904_v52 = vpop.f32.mrb[7].mxu0  ;;  %v1975_v26 = vpop.f32.mrb[7].mxu1  ;;  %v2878_v57 = vadd.f32 %v1973_v1, %v4690_v43 }
 0x442   :  { %v2871_v49 = vadd.f32 %v1904_v52, %v4656_v55  ;;  %v2879_v28 = vadd.f32 %v1975_v26, %v4657_v15 }
 0x443   :  { %v2217_v6 = vmul.f32 -1.442695, %v2870_v19 }
 0x444   :  { %v2218_v13 = vmul.f32 -1.442695, %v2871_v49  ;;  %v2219_v46 = vmul.f32 -1.442695, %v2879_v28 }
 0x445   :  { %3028 = vpow2.f32 %v2217_v6 }
 0x446   :  { %3030 = vpow2.f32 %v2218_v13 }
 0x447   :  { %3032 = vpow2.f32 %v2219_v46 }
 0x448   :  { %3034 = vtanh.f32 %v2878_v57 }
 0x44f   :  { %v3029_v40 = vpop.eup %3028 }
 0x450   :  { %v3031_v3 = vpop.eup %3030  ;;  %v2131_v10 = vadd.f32 1.0, %v3029_v40 }
 0x451   :  { %v2137_v7 = vadd.f32 1.0, %v3031_v3  ;;  %v3033_v33 = vpop.eup %3032 }
 0x452   :  { %3036 = vrcp.f32 %v2131_v10  ;;  %v3035_v2 = vpop.eup %3034  ;;  %v2144_v5 = vadd.f32 1.0, %v3033_v33 }
 0x453   :  { %3038 = vrcp.f32 %v2137_v7 }
 0x454   :  { %3040 = vrcp.f32 %v2144_v5 }
 0x45c   :  { %v3037_v55 = vpop.eup %3036 }
 0x45d   :  { %v3039_v4 = vpop.eup %3038  ;;  %v2148_v54 = vmul.f32 %v3037_v55, %v3035_v2 }
 0x45e   :  { %v2147_v21 = vmul.f32 %v3039_v4, %v4431_v22  ;;  %v3041_v17 = vpop.eup %3040 }
 0x460   :  { %v2149_v15 = vadd.f32 %v2148_v54, %v2147_v21  ;;  %v2048_v37 = vpop.f32.mrb[8].mxu0  ;;  %v2119_v61 = vpop.f32.mrb[8].mxu1 }
 0x461   :  { %v2880_v43 = vadd.f32 %v2048_v37, %v4659_v42  ;;  %v2050_v20 = vpop.f32.mrb[9].mxu0  ;;  %v2121_v47 = vpop.f32.mrb[9].mxu1  ;;  %v2888_v32 = vadd.f32 %v2119_v61, %v4197_v58 }
 0x462   :  { %3042 = vtanh.f32 %v2149_v15  ;;  %v2881_v9 = vadd.f32 %v2050_v20, %v4187_v0  ;;  %v2889_v11 = vadd.f32 %v2121_v47, %v4194_v45 }
 0x463   :  { %v2220_v18 = vmul.f32 -1.442695, %v2880_v43 }
 0x464   :  { %v2221_v41 = vmul.f32 -1.442695, %v2881_v9  ;;  %v2222_v22 = vmul.f32 -1.442695, %v2889_v11 }
 0x465   :  { %3044 = vpow2.f32 %v2220_v18 }
 0x466   :  { %3046 = vpow2.f32 %v2221_v41 }
 0x467   :  { %3048 = vpow2.f32 %v2222_v22 }
 0x468   :  { %3050 = vtanh.f32 %v2888_v32 }
 0x46c   :  { %v3043_v30 = vpop.eup %3042 }
 0x46d   :  { %v2151_v31 = vmul.f32 %v3043_v30, %v3041_v17 }
 0x46f   :  { %v3045_v36 = vpop.eup %3044  ;;  %v2176_v42 = vsel %vm1081_vm5, %v2151_v31, 0.0 }
 0x470   :  { %v3047_v59 = vpop.eup %3046  ;;  %2223 = vst [vmem:[%s4515_s6 + $0x30] sm:$0xff] %v2176_v42  ;;  %v2155_v0 = vadd.f32 1.0, %v3045_v36 }
 0x471   :  { %v2161_v53 = vadd.f32 1.0, %v3047_v59  ;;  %v3049_v45 = vpop.eup %3048 }
 0x472   :  { %3052 = vrcp.f32 %v2155_v0  ;;  %v3051_v8 = vpop.eup %3050  ;;  %v2168_v16 = vadd.f32 1.0, %v3049_v45 }
 0x473   :  { %3054 = vrcp.f32 %v2161_v53 }
 0x474   :  { %3056 = vrcp.f32 %v2168_v16 }
 0x47c   :  { %v3053_v51 = vpop.eup %3052 }
 0x47d   :  { %v3055_v56 = vpop.eup %3054  ;;  %v2172_v58 = vmul.f32 %v3053_v51, %v3051_v8 }
 0x47e   :  { %v2171_v35 = vmul.f32 %v3055_v56, %v4469_v14  ;;  %v3057_v29 = vpop.eup %3056 }
 0x480   :  { %v2173_v44 = vadd.f32 %v2172_v58, %v2171_v35 }
 0x482   :  { %3058 = vtanh.f32 %v2173_v44 }
 0x48c   :  { %v3059_v34 = vpop.eup %3058 }
 0x48d   :  { %v2175_v38 = vmul.f32 %v3059_v34, %v3057_v29 }
 0x48f   :  { %v2178_v39 = vsel %vm1074_vm4, %v2175_v38, 0.0 }
 0x490   :  { %2179 = vst [vmem:[%s4515_s6 + $0x8] sm:$0xff] %v2178_v39 }

</bundles_post_ra>
